<compile_context>
chip_gen: v7x
topology: tpu7x:2x2x1
jax: 0.10.0
libtpu: 0.0.40
codegen_flags: <defaults>
</compile_context>

<pallas_src>
from functools import partial

import jax
import jax.numpy as jnp
from jax import lax
from jax.experimental import pallas as pl
from jax.experimental.pallas import tpu as pltpu


# ----------------------------------------------------------------------------
# Kernels
# ----------------------------------------------------------------------------

def _ln_dual_proj_kernel(x_ref, g_ref, b_ref,
                         w1_ref, b1_ref, w2_ref, b2_ref,
                         xln_ref, y1_ref, y2_ref, *, eps):
    # x_ref: [TR, C]; g/b: [1, C]; w1/w2: [C, E]; b1/b2: [1, E]
    x = x_ref[...]
    mean = jnp.mean(x, axis=-1, keepdims=True)
    xc = x - mean
    var = jnp.mean(xc * xc, axis=-1, keepdims=True)
    xln = xc * lax.rsqrt(var + eps) * g_ref[...] + b_ref[...]
    xln_ref[...] = xln
    y1_ref[...] = (jnp.dot(xln, w1_ref[...],
                           preferred_element_type=jnp.float32) + b1_ref[...])
    y2_ref[...] = (jnp.dot(xln, w2_ref[...],
                           preferred_element_type=jnp.float32) + b2_ref[...])


def _linear_residual_kernel(x_ref, w_ref, b_ref, res_ref, o_ref):
    # out = residual + x @ W + b   (gamma already folded into W / b by the caller)
    o_ref[...] = (res_ref[...]
                  + jnp.dot(x_ref[...], w_ref[...],
                            preferred_element_type=jnp.float32)
                  + b_ref[...])


def _bi_attention_kernel(q_ref, k_ref, vv_ref, vl_ref, mask_ref, ov_ref, ol_ref):
    # Per grid step: one (batch, head) pair.
    # q_ref:  [1, 1, Tv, D]   k_ref:  [1, 1, Tl, D]
    # vv_ref: [1, 1, Tv, D]   vl_ref: [1, 1, Tl, D]   mask_ref: [1, 1, Tl]
    q = q_ref[0, 0]          # [Tv, D]  (query scale already folded into the projection)
    k = k_ref[0, 0]          # [Tl, D]
    vv = vv_ref[0, 0]        # [Tv, D]
    vl = vl_ref[0, 0]        # [Tl, D]

    # attn_weights = q @ k^T, clamped (clamp_min/max_for_overflow in the PyTorch module)
    s = lax.dot_general(q, k, (((1,), (1,)), ((), ())),
                        preferred_element_type=jnp.float32)   # [Tv, Tl]
    s = jnp.clip(s, -50000.0, 50000.0)

    # ---- language branch: softmax over the VISION axis of s^T (done without an
    #      explicit transpose: reduce over axis=0), matching
    #      softmax(clip(attn_weights^T - rowmax, -50000, 50000))
    m_l = jnp.max(s, axis=0, keepdims=True)                   # [1, Tl]
    e_l = jnp.exp(jnp.clip(s - m_l, -50000.0, 50000.0))       # [Tv, Tl]
    p_l = e_l / jnp.sum(e_l, axis=0, keepdims=True)
    out_l = lax.dot_general(p_l, vv, (((0,), (0,)), ((), ())),
                            preferred_element_type=jnp.float32)  # [Tl, D]

    # ---- vision branch: PyTorch adds masked_fill(mask == 0, -9e15) (keeping the raw
    #      nonzero mask values!) to the clamped weights, then softmaxes over Tl.
    am = mask_ref[0]                                           # [1, Tl]
    am = jnp.where(am == 0.0, -9e15, am)
    w_v = s + am                                               # [Tv, Tl]
    m_v = jnp.max(w_v, axis=-1, keepdims=True)
    e_v = jnp.exp(w_v - m_v)
    p_v = e_v / jnp.sum(e_v, axis=-1, keepdims=True)
    out_v = jnp.dot(p_v, vl, preferred_element_type=jnp.float32)  # [Tv, D]

    ov_ref[0, 0] = out_v
    ol_ref[0, 0] = out_l


# ----------------------------------------------------------------------------
# Pallas-call wrappers
# ----------------------------------------------------------------------------

_ROW_TILE = 256          # multiple of 8; keeps per-step VMEM bounded for big token counts
_VMEM_LIMIT = 48 << 20   # headroom for large hidden dims; still < v7x's 64 MiB VMEM


def _row_tile(n):
    return n if n <= _ROW_TILE else _ROW_TILE


def ln_dual_proj(x, gamma, beta, w1_t, b1, w2_t, b2, *, eps=1e-5):
    """LayerNorm(x) followed by two projections of the normed tensor.

    x: [N, C], w*_t: [C, E] (already transposed), b*: [E].
    Returns (x_ln [N,C], y1 [N,E], y2 [N,E]).
    """
    n, c = x.shape
    e = w1_t.shape[1]
    tr = _row_tile(n)
    return pl.pallas_call(
        partial(_ln_dual_proj_kernel, eps=eps),
        out_shape=(jax.ShapeDtypeStruct((n, c), jnp.float32),
                   jax.ShapeDtypeStruct((n, e), jnp.float32),
                   jax.ShapeDtypeStruct((n, e), jnp.float32)),
        grid=(pl.cdiv(n, tr),),
        in_specs=[
            pl.BlockSpec((tr, c), lambda i: (i, 0)),
            pl.BlockSpec((1, c), lambda i: (0, 0)),
            pl.BlockSpec((1, c), lambda i: (0, 0)),
            pl.BlockSpec((c, e), lambda i: (0, 0)),
            pl.BlockSpec((1, e), lambda i: (0, 0)),
            pl.BlockSpec((c, e), lambda i: (0, 0)),
            pl.BlockSpec((1, e), lambda i: (0, 0)),
        ],
        out_specs=(
            pl.BlockSpec((tr, c), lambda i: (i, 0)),
            pl.BlockSpec((tr, e), lambda i: (i, 0)),
            pl.BlockSpec((tr, e), lambda i: (i, 0)),
        ),
        compiler_params=pltpu.CompilerParams(
            dimension_semantics=("parallel",),
            vmem_limit_bytes=_VMEM_LIMIT),
    )(x.astype(jnp.float32), gamma.reshape(1, c), beta.reshape(1, c),
      w1_t, b1.reshape(1, e), w2_t, b2.reshape(1, e))


def linear_residual(x, w_t, b, res):
    """res + x @ w_t + b  (fused output projection + gamma-scaled residual add)."""
    n, din = x.shape
    dout = w_t.shape[1]
    tr = _row_tile(n)
    return pl.pallas_call(
        _linear_residual_kernel,
        out_shape=jax.ShapeDtypeStruct((n, dout), jnp.float32),
        grid=(pl.cdiv(n, tr),),
        in_specs=[
            pl.BlockSpec((tr, din), lambda i: (i, 0)),
            pl.BlockSpec((din, dout), lambda i: (0, 0)),
            pl.BlockSpec((1, dout), lambda i: (0, 0)),
            pl.BlockSpec((tr, dout), lambda i: (i, 0)),
        ],
        out_specs=pl.BlockSpec((tr, dout), lambda i: (i, 0)),
        compiler_params=pltpu.CompilerParams(
            dimension_semantics=("parallel",),
            vmem_limit_bytes=_VMEM_LIMIT),
    )(x, w_t, b.reshape(1, dout), res)


def bi_attention_core(q4, k4, vv4, vl4, mask3):
    """q4/vv4: [B,H,Tv,D], k4/vl4: [B,H,Tl,D], mask3: [B,1,Tl] -> ([B,H,Tv,D], [B,H,Tl,D])."""
    bsz, h, tv, d = q4.shape
    tl = k4.shape[2]
    return pl.pallas_call(
        _bi_attention_kernel,
        out_shape=(jax.ShapeDtypeStruct((bsz, h, tv, d), jnp.float32),
                   jax.ShapeDtypeStruct((bsz, h, tl, d), jnp.float32)),
        grid=(bsz, h),
        in_specs=[
            pl.BlockSpec((1, 1, tv, d), lambda b, hh: (b, hh, 0, 0)),
            pl.BlockSpec((1, 1, tl, d), lambda b, hh: (b, hh, 0, 0)),
            pl.BlockSpec((1, 1, tv, d), lambda b, hh: (b, hh, 0, 0)),
            pl.BlockSpec((1, 1, tl, d), lambda b, hh: (b, hh, 0, 0)),
            pl.BlockSpec((1, 1, tl), lambda b, hh: (b, 0, 0)),
        ],
        out_specs=(
            pl.BlockSpec((1, 1, tv, d), lambda b, hh: (b, hh, 0, 0)),
            pl.BlockSpec((1, 1, tl, d), lambda b, hh: (b, hh, 0, 0)),
        ),
        compiler_params=pltpu.CompilerParams(
            dimension_semantics=("parallel", "parallel"),
            vmem_limit_bytes=_VMEM_LIMIT),
    )(q4, k4, vv4, vl4, mask3)


# ----------------------------------------------------------------------------
# Full module forward
# ----------------------------------------------------------------------------

def bi_attention_block_forward(params, v, l, attention_mask_l=None, *, num_heads):
    bsz, tv, v_dim = v.shape
    _, tl, l_dim = l.shape
    embed_dim = params["v_proj_w"].shape[0]
    head_dim = embed_dim // num_heads
    scale = head_dim ** -0.5

    # 1) Fused LayerNorm + projections per branch (the PyTorch block adds the residual
    #    to the *normed* tensors, so the LN output is also returned for step 4).
    #    The query scale is folded into the q weights/bias (free).
    v_ln, q, vv = ln_dual_proj(
        v.reshape(bsz * tv, v_dim), params["ln_v_g"], params["ln_v_b"],
        (params["v_proj_w"] * scale).T, params["v_proj_b"] * scale,
        params["values_v_w"].T, params["values_v_b"])
    l_ln, k, vl = ln_dual_proj(
        l.reshape(bsz * tl, l_dim), params["ln_l_g"], params["ln_l_b"],
        params["l_proj_w"].T, params["l_proj_b"],
        params["values_l_w"].T, params["values_l_b"])

    def split_heads(x, t):
        return x.reshape(bsz, t, num_heads, head_dim).transpose(0, 2, 1, 3)

    q4, vv4 = split_heads(q, tv), split_heads(vv, tv)
    k4, vl4 = split_heads(k, tl), split_heads(vl, tl)

    if attention_mask_l is None:
        # all-ones additive mask == per-row constant shift == identical softmax (no-mask path)
        mask3 = jnp.ones((bsz, 1, tl), jnp.float32)
    else:
        mask3 = attention_mask_l.astype(jnp.float32).reshape(bsz, 1, tl)

    # 2) Fused bi-directional attention core (grid over batch x head).
    ov4, ol4 = bi_attention_core(q4, k4, vv4, vl4, mask3)

    attn_v = ov4.transpose(0, 2, 1, 3).reshape(bsz * tv, embed_dim)
    attn_l = ol4.transpose(0, 2, 1, 3).reshape(bsz * tl, embed_dim)

    # 3) Output projections with gamma folded into W/b, fused with the residual add.
    w_ov = params["out_v_w"].T * params["gamma_v"][None, :]
    b_ov = params["out_v_b"] * params["gamma_v"]
    w_ol = params["out_l_w"].T * params["gamma_l"][None, :]
    b_ol = params["out_l_b"] * params["gamma_l"]

    v_out = linear_residual(attn_v, w_ov, b_ov, v_ln).reshape(bsz, tv, v_dim)
    l_out = linear_residual(attn_l, w_ol, b_ol, l_ln).reshape(bsz, tl, l_dim)
    return v_out, l_out


# ----------------------------------------------------------------------------
# Pure-JAX reference mirroring the PyTorch forward (eval mode)
# ----------------------------------------------------------------------------

def _reference(params, v, l, attention_mask_l, num_heads):
    def ln(x, g, b, eps=1e-5):
        m = jnp.mean(x, axis=-1, keepdims=True)
        var = jnp.mean((x - m) ** 2, axis=-1, keepdims=True)
        return (x - m) / jnp.sqrt(var + eps) * g + b

    v = ln(v, params["ln_v_g"], params["ln_v_b"])
    l = ln(l, params["ln_l_g"], params["ln_l_b"])
    bsz, tv, _ = v.shape
    _, tl, _ = l.shape
    embed_dim = params["v_proj_w"].shape[0]
    head_dim = embed_dim // num_heads
    scale = head_dim ** -0.5

    q = (v @ params["v_proj_w"].T + params["v_proj_b"]) * scale
    k = l @ params["l_proj_w"].T + params["l_proj_b"]
    vv = v @ params["values_v_w"].T + params["values_v_b"]
    vl = l @ params["values_l_w"].T + params["values_l_b"]

    def sh(x, t):
        return x.reshape(bsz, t, num_heads, head_dim).transpose(0, 2, 1, 3).reshape(
            bsz * num_heads, t, head_dim)

    qs, ks, vvs, vls = sh(q, tv), sh(k, tl), sh(vv, tv), sh(vl, tl)
    w = jnp.einsum("bqd,bkd->bqk", qs, ks)
    w = jnp.clip(w, -50000.0, 50000.0)

    w_t = jnp.swapaxes(w, 1, 2)
    w_l = jnp.clip(w_t - jnp.max(w_t, axis=-1, keepdims=True), -50000.0, 50000.0)
    probs_l = jax.nn.softmax(w_l, axis=-1)

    if attention_mask_l is not None:
        am = attention_mask_l.astype(jnp.float32)[:, None, None, :]
        am = jnp.where(am == 0, -9e15, am)
        w = (w.reshape(bsz, num_heads, tv, tl) + am).reshape(bsz * num_heads, tv, tl)
    probs_v = jax.nn.softmax(w, axis=-1)

    out_v = jnp.einsum("bqk,bkd->bqd", probs_v, vls)
    out_l = jnp.einsum("bkq,bqd->bkd", probs_l, vvs)
    out_v = out_v.reshape(bsz, num_heads, tv, head_dim).transpose(0, 2, 1, 3).reshape(bsz, tv, embed_dim)
    out_l = out_l.reshape(bsz, num_heads, tl, head_dim).transpose(0, 2, 1, 3).reshape(bsz, tl, embed_dim)

    delta_v = out_v @ params["out_v_w"].T + params["out_v_b"]
    delta_l = out_l @ params["out_l_w"].T + params["out_l_b"]
    v_out = v + params["gamma_v"] * delta_v
    l_out = l + params["gamma_l"] * delta_l
    aux = {"v_ln": v, "l_ln": l, "delta_v": delta_v, "delta_l": delta_l}
    return v_out, l_out, aux


# ----------------------------------------------------------------------------
# Demo / self-test
# ----------------------------------------------------------------------------

if __name__ == "__main__":
    B, TV, TL = 2, 16, 8
    V_DIM = L_DIM = 32
    EMBED_DIM = 32
    NUM_HEADS = 4
    INIT_VALUES = 1e-4  # module default for gamma_v / gamma_l

    key = jax.random.PRNGKey(0)
    ks = jax.random.split(key, 24)

    def w_init(k, shape):
        return jax.random.normal(k, shape, jnp.float32) / jnp.sqrt(shape[-1])

    params = dict(
        ln_v_g=1.0 + 0.1 * jax.random.normal(ks[0], (V_DIM,), jnp.float32),
        ln_v_b=0.1 * jax.random.normal(ks[1], (V_DIM,), jnp.float32),
        ln_l_g=1.0 + 0.1 * jax.random.normal(ks[2], (L_DIM,), jnp.float32),
        ln_l_b=0.1 * jax.random.normal(ks[3], (L_DIM,), jnp.float32),
        v_proj_w=w_init(ks[4], (EMBED_DIM, V_DIM)),
        v_proj_b=0.1 * jax.random.normal(ks[5], (EMBED_DIM,), jnp.float32),
        l_proj_w=w_init(ks[6], (EMBED_DIM, L_DIM)),
        l_proj_b=0.1 * jax.random.normal(ks[7], (EMBED_DIM,), jnp.float32),
        values_v_w=w_init(ks[8], (EMBED_DIM, V_DIM)),
        values_v_b=0.1 * jax.random.normal(ks[9], (EMBED_DIM,), jnp.float32),
        values_l_w=w_init(ks[10], (EMBED_DIM, L_DIM)),
        values_l_b=0.1 * jax.random.normal(ks[11], (EMBED_DIM,), jnp.float32),
        out_v_w=w_init(ks[12], (V_DIM, EMBED_DIM)),
        out_v_b=0.1 * jax.random.normal(ks[13], (V_DIM,), jnp.float32),
        out_l_w=w_init(ks[14], (L_DIM, EMBED_DIM)),
        out_l_b=0.1 * jax.random.normal(ks[15], (L_DIM,), jnp.float32),
        gamma_v=INIT_VALUES * jnp.ones((V_DIM,), jnp.float32),
        gamma_l=INIT_VALUES * jnp.ones((L_DIM,), jnp.float32),
    )

    v_in = jax.random.normal(ks[16], (B, TV, V_DIM), jnp.float32)
    l_in = jax.random.normal(ks[17], (B, TL, L_DIM), jnp.float32)
    mask_l = jax.random.bernoulli(ks[18], 0.7, (B, TL)).astype(jnp.float32)
    mask_l = mask_l.at[:, 0].set(1.0)  # keep at least one valid language token per row

    forward = jax.jit(bi_attention_block_forward, static_argnames=("num_heads",))
    v_out, l_out = forward(params, v_in, l_in, mask_l, num_heads=NUM_HEADS)
    v_out, l_out = jax.block_until_ready((v_out, l_out))

    v_ref, l_ref, aux = _reference(params, v_in, l_in, mask_l, NUM_HEADS)

    assert v_out.shape == (B, TV, V_DIM) and l_out.shape == (B, TL, L_DIM)
    assert jnp.allclose(v_out, v_ref, atol=1e-4, rtol=1e-4), "v output mismatch"
    assert jnp.allclose(l_out, l_ref, atol=1e-4, rtol=1e-4), "l output mismatch"

    # Sensitivity check on the attention deltas themselves (looser tolerance: MXU vs XLA
    # matmul rounding), catches structural bugs (wrong softmax axis / mask / clamp order).
    dv_k = (v_out - aux["v_ln"]) / params["gamma_v"]
    dl_k = (l_out - aux["l_ln"]) / params["gamma_l"]
    assert jnp.allclose(dv_k, aux["delta_v"], atol=5e-2, rtol=5e-2), "delta_v mismatch"
    assert jnp.allclose(dl_k, aux["delta_l"], atol=5e-2, rtol=5e-2), "delta_l mismatch"

    # Also check the no-mask path compiles/runs and matches.
    v_nm, l_nm = jax.block_until_ready(
        forward(params, v_in, l_in, None, num_heads=NUM_HEADS))
    v_rn, l_rn, _ = _reference(params, v_in, l_in, None, NUM_HEADS)
    assert jnp.allclose(v_nm, v_rn, atol=1e-4, rtol=1e-4), "no-mask v mismatch"
    assert jnp.allclose(l_nm, l_rn, atol=1e-4, rtol=1e-4), "no-mask l mismatch"

    print("KERNEL_OK")
</pallas_src>

<mosaic_0001>
module attributes {stable_mosaic.version = 11 : i64} {
  func.func @_ln_dual_proj_kernel(%arg0: i32, %arg1: memref<16x32xf32, #tpu.memory_space<vmem>>, %arg2: memref<1x32xf32, #tpu.memory_space<vmem>>, %arg3: memref<1x32xf32, #tpu.memory_space<vmem>>, %arg4: memref<32x32xf32, #tpu.memory_space<vmem>>, %arg5: memref<1x32xf32, #tpu.memory_space<vmem>>, %arg6: memref<32x32xf32, #tpu.memory_space<vmem>>, %arg7: memref<1x32xf32, #tpu.memory_space<vmem>>, %arg8: memref<16x32xf32, #tpu.memory_space<vmem>>, %arg9: memref<16x32xf32, #tpu.memory_space<vmem>>, %arg10: memref<16x32xf32, #tpu.memory_space<vmem>>) attributes {dimension_semantics = [#tpu.dimension_semantics<parallel>], iteration_bounds = array<i64: 1>, scalar_prefetch = 0 : i64, scratch_operands = 0 : i64, tpu.core_type = #tpu.core_type<tc>, window_params = [{transform_indices = @transform_0, window_bounds = array<i64: 16, 32>}, {pipeline_mode = #tpu.pipeline_mode<synchronous>, transform_indices = @transform_1, window_bounds = array<i64: 1, 32>}, {pipeline_mode = #tpu.pipeline_mode<synchronous>, transform_indices = @transform_2, window_bounds = array<i64: 1, 32>}, {pipeline_mode = #tpu.pipeline_mode<synchronous>, transform_indices = @transform_3, window_bounds = array<i64: 32, 32>}, {pipeline_mode = #tpu.pipeline_mode<synchronous>, transform_indices = @transform_4, window_bounds = array<i64: 1, 32>}, {pipeline_mode = #tpu.pipeline_mode<synchronous>, transform_indices = @transform_5, window_bounds = array<i64: 32, 32>}, {pipeline_mode = #tpu.pipeline_mode<synchronous>, transform_indices = @transform_6, window_bounds = array<i64: 1, 32>}, {transform_indices = @transform_7, window_bounds = array<i64: 16, 32>}, {transform_indices = @transform_8, window_bounds = array<i64: 16, 32>}, {transform_indices = @transform_9, window_bounds = array<i64: 16, 32>}]} {
    %c0 = arith.constant 0 : index
    %c0_0 = arith.constant 0 : index
    %0 = vector.load %arg1[%c0, %c0_0] : memref<16x32xf32, #tpu.memory_space<vmem>>, vector<16x32xf32>
    %cst = arith.constant dense<0.000000e+00> : vector<16xf32>
    %1 = vector.multi_reduction <add>, %0, %cst [1] : vector<16x32xf32> to vector<16xf32>
    %2 = vector.shape_cast %1 : vector<16xf32> to vector<16x1xf32>
    %cst_1 = arith.constant 3.200000e+01 : f32
    %3 = vector.broadcast %cst_1 : f32 to vector<16x1xf32>
    %4 = arith.divf %2, %3 : vector<16x1xf32>
    %5 = vector.broadcast %4 : vector<16x1xf32> to vector<16x32xf32>
    %6 = arith.subf %0, %5 : vector<16x32xf32>
    %7 = arith.mulf %6, %6 : vector<16x32xf32>
    %cst_2 = arith.constant dense<0.000000e+00> : vector<16xf32>
    %8 = vector.multi_reduction <add>, %7, %cst_2 [1] : vector<16x32xf32> to vector<16xf32>
    %9 = vector.shape_cast %8 : vector<16xf32> to vector<16x1xf32>
    %cst_3 = arith.constant 3.200000e+01 : f32
    %10 = vector.broadcast %cst_3 : f32 to vector<16x1xf32>
    %11 = arith.divf %9, %10 : vector<16x1xf32>
    %cst_4 = arith.constant 9.99999974E-6 : f32
    %12 = vector.broadcast %cst_4 : f32 to vector<16x1xf32>
    %13 = arith.addf %11, %12 : vector<16x1xf32>
    %14 = math.rsqrt %13 : vector<16x1xf32>
    %15 = vector.broadcast %14 : vector<16x1xf32> to vector<16x32xf32>
    %16 = arith.mulf %6, %15 : vector<16x32xf32>
    %c0_5 = arith.constant 0 : index
    %c0_6 = arith.constant 0 : index
    %17 = vector.load %arg2[%c0_5, %c0_6] : memref<1x32xf32, #tpu.memory_space<vmem>>, vector<1x32xf32>
    %18 = vector.broadcast %17 : vector<1x32xf32> to vector<16x32xf32>
    %19 = arith.mulf %16, %18 : vector<16x32xf32>
    %c0_7 = arith.constant 0 : index
    %c0_8 = arith.constant 0 : index
    %20 = vector.load %arg3[%c0_7, %c0_8] : memref<1x32xf32, #tpu.memory_space<vmem>>, vector<1x32xf32>
    %21 = vector.broadcast %20 : vector<1x32xf32> to vector<16x32xf32>
    %22 = arith.addf %19, %21 : vector<16x32xf32>
    %c0_9 = arith.constant 0 : index
    %c0_10 = arith.constant 0 : index
    %23 = vector.load %arg8[%c0_9, %c0_10] : memref<16x32xf32, #tpu.memory_space<vmem>>, vector<16x32xf32>
    tpu.vector_store %arg8[%c0_9, %c0_10], %22 {strides = array<i32>} : memref<16x32xf32, #tpu.memory_space<vmem>>, vector<16x32xf32>,
    %c0_11 = arith.constant 0 : index
    %c0_12 = arith.constant 0 : index
    %24 = vector.load %arg4[%c0_11, %c0_12] : memref<32x32xf32, #tpu.memory_space<vmem>>, vector<32x32xf32>
    %cst_13 = arith.constant dense<0.000000e+00> : vector<16x32xf32>
    %25 = tpu.matmul %22, %24, %cst_13 {dimension_numbers = #tpu.dot_dimension_numbers<[1], [0], [0], [1], [0, 0, 1, 1], [], []>} : vector<16x32xf32>, vector<32x32xf32>, vector<16x32xf32> -> vector<16x32xf32>
    %c0_14 = arith.constant 0 : index
    %c0_15 = arith.constant 0 : index
    %26 = vector.load %arg5[%c0_14, %c0_15] : memref<1x32xf32, #tpu.memory_space<vmem>>, vector<1x32xf32>
    %27 = vector.broadcast %26 : vector<1x32xf32> to vector<16x32xf32>
    %28 = arith.addf %25, %27 : vector<16x32xf32>
    %c0_16 = arith.constant 0 : index
    %c0_17 = arith.constant 0 : index
    %29 = vector.load %arg9[%c0_16, %c0_17] : memref<16x32xf32, #tpu.memory_space<vmem>>, vector<16x32xf32>
    tpu.vector_store %arg9[%c0_16, %c0_17], %28 {strides = array<i32>} : memref<16x32xf32, #tpu.memory_space<vmem>>, vector<16x32xf32>,
    %c0_18 = arith.constant 0 : index
    %c0_19 = arith.constant 0 : index
    %30 = vector.load %arg6[%c0_18, %c0_19] : memref<32x32xf32, #tpu.memory_space<vmem>>, vector<32x32xf32>
    %cst_20 = arith.constant dense<0.000000e+00> : vector<16x32xf32>
    %31 = tpu.matmul %22, %30, %cst_20 {dimension_numbers = #tpu.dot_dimension_numbers<[1], [0], [0], [1], [0, 0, 1, 1], [], []>} : vector<16x32xf32>, vector<32x32xf32>, vector<16x32xf32> -> vector<16x32xf32>
    %c0_21 = arith.constant 0 : index
    %c0_22 = arith.constant 0 : index
    %32 = vector.load %arg7[%c0_21, %c0_22] : memref<1x32xf32, #tpu.memory_space<vmem>>, vector<1x32xf32>
    %33 = vector.broadcast %32 : vector<1x32xf32> to vector<16x32xf32>
    %34 = arith.addf %31, %33 : vector<16x32xf32>
    %c0_23 = arith.constant 0 : index
    %c0_24 = arith.constant 0 : index
    %35 = vector.load %arg10[%c0_23, %c0_24] : memref<16x32xf32, #tpu.memory_space<vmem>>, vector<16x32xf32>
    tpu.vector_store %arg10[%c0_23, %c0_24], %34 {strides = array<i32>} : memref<16x32xf32, #tpu.memory_space<vmem>>, vector<16x32xf32>,
    return
  }
  func.func @transform_0(%arg0: i32) -> (i32, i32) {
    %c0_i32 = arith.constant 0 : i32
    %c0_i32_0 = arith.constant 0 : i32
    return %arg0, %c0_i32 : i32, i32
  }
  func.func @transform_1(%arg0: i32) -> (i32, i32) {
    %c0_i32 = arith.constant 0 : i32
    %c0_i32_0 = arith.constant 0 : i32
    %c0_i32_1 = arith.constant 0 : i32
    return %c0_i32, %c0_i32_0 : i32, i32
  }
  func.func @transform_2(%arg0: i32) -> (i32, i32) {
    %c0_i32 = arith.constant 0 : i32
    %c0_i32_0 = arith.constant 0 : i32
    %c0_i32_1 = arith.constant 0 : i32
    return %c0_i32, %c0_i32_0 : i32, i32
  }
  func.func @transform_3(%arg0: i32) -> (i32, i32) {
    %c0_i32 = arith.constant 0 : i32
    %c0_i32_0 = arith.constant 0 : i32
    %c0_i32_1 = arith.constant 0 : i32
    return %c0_i32, %c0_i32_0 : i32, i32
  }
  func.func @transform_4(%arg0: i32) -> (i32, i32) {
    %c0_i32 = arith.constant 0 : i32
    %c0_i32_0 = arith.constant 0 : i32
    %c0_i32_1 = arith.constant 0 : i32
    return %c0_i32, %c0_i32_0 : i32, i32
  }
  func.func @transform_5(%arg0: i32) -> (i32, i32) {
    %c0_i32 = arith.constant 0 : i32
    %c0_i32_0 = arith.constant 0 : i32
    %c0_i32_1 = arith.constant 0 : i32
    return %c0_i32, %c0_i32_0 : i32, i32
  }
  func.func @transform_6(%arg0: i32) -> (i32, i32) {
    %c0_i32 = arith.constant 0 : i32
    %c0_i32_0 = arith.constant 0 : i32
    %c0_i32_1 = arith.constant 0 : i32
    return %c0_i32, %c0_i32_0 : i32, i32
  }
  func.func @transform_7(%arg0: i32) -> (i32, i32) {
    %c0_i32 = arith.constant 0 : i32
    %c0_i32_0 = arith.constant 0 : i32
    return %arg0, %c0_i32 : i32, i32
  }
  func.func @transform_8(%arg0: i32) -> (i32, i32) {
    %c0_i32 = arith.constant 0 : i32
    %c0_i32_0 = arith.constant 0 : i32
    return %arg0, %c0_i32 : i32, i32
  }
  func.func @transform_9(%arg0: i32) -> (i32, i32) {
    %c0_i32 = arith.constant 0 : i32
    %c0_i32_0 = arith.constant 0 : i32
    return %arg0, %c0_i32 : i32, i32
  }
}

module attributes {stable_mosaic.version = 11 : i64} {
  func.func @_ln_dual_proj_kernel(%arg0: i32, %arg1: memref<32x32xf32, #tpu.memory_space<vmem>>, %arg2: memref<1x32xf32, #tpu.memory_space<vmem>>, %arg3: memref<1x32xf32, #tpu.memory_space<vmem>>, %arg4: memref<32x32xf32, #tpu.memory_space<vmem>>, %arg5: memref<1x32xf32, #tpu.memory_space<vmem>>, %arg6: memref<32x32xf32, #tpu.memory_space<vmem>>, %arg7: memref<1x32xf32, #tpu.memory_space<vmem>>, %arg8: memref<32x32xf32, #tpu.memory_space<vmem>>, %arg9: memref<32x32xf32, #tpu.memory_space<vmem>>, %arg10: memref<32x32xf32, #tpu.memory_space<vmem>>) attributes {dimension_semantics = [#tpu.dimension_semantics<parallel>], iteration_bounds = array<i64: 1>, scalar_prefetch = 0 : i64, scratch_operands = 0 : i64, tpu.core_type = #tpu.core_type<tc>, window_params = [{transform_indices = @transform_0, window_bounds = array<i64: 32, 32>}, {pipeline_mode = #tpu.pipeline_mode<synchronous>, transform_indices = @transform_1, window_bounds = array<i64: 1, 32>}, {pipeline_mode = #tpu.pipeline_mode<synchronous>, transform_indices = @transform_2, window_bounds = array<i64: 1, 32>}, {pipeline_mode = #tpu.pipeline_mode<synchronous>, transform_indices = @transform_3, window_bounds = array<i64: 32, 32>}, {pipeline_mode = #tpu.pipeline_mode<synchronous>, transform_indices = @transform_4, window_bounds = array<i64: 1, 32>}, {pipeline_mode = #tpu.pipeline_mode<synchronous>, transform_indices = @transform_5, window_bounds = array<i64: 32, 32>}, {pipeline_mode = #tpu.pipeline_mode<synchronous>, transform_indices = @transform_6, window_bounds = array<i64: 1, 32>}, {transform_indices = @transform_7, window_bounds = array<i64: 32, 32>}, {transform_indices = @transform_8, window_bounds = array<i64: 32, 32>}, {transform_indices = @transform_9, window_bounds = array<i64: 32, 32>}]} {
    %c0 = arith.constant 0 : index
    %c0_0 = arith.constant 0 : index
    %0 = vector.load %arg1[%c0, %c0_0] : memref<32x32xf32, #tpu.memory_space<vmem>>, vector<32x32xf32>
    %cst = arith.constant dense<0.000000e+00> : vector<32xf32>
    %1 = vector.multi_reduction <add>, %0, %cst [1] : vector<32x32xf32> to vector<32xf32>
    %2 = vector.shape_cast %1 : vector<32xf32> to vector<32x1xf32>
    %cst_1 = arith.constant 3.200000e+01 : f32
    %3 = vector.broadcast %cst_1 : f32 to vector<32x1xf32>
    %4 = arith.divf %2, %3 : vector<32x1xf32>
    %5 = vector.broadcast %4 : vector<32x1xf32> to vector<32x32xf32>
    %6 = arith.subf %0, %5 : vector<32x32xf32>
    %7 = arith.mulf %6, %6 : vector<32x32xf32>
    %cst_2 = arith.constant dense<0.000000e+00> : vector<32xf32>
    %8 = vector.multi_reduction <add>, %7, %cst_2 [1] : vector<32x32xf32> to vector<32xf32>
    %9 = vector.shape_cast %8 : vector<32xf32> to vector<32x1xf32>
    %cst_3 = arith.constant 3.200000e+01 : f32
    %10 = vector.broadcast %cst_3 : f32 to vector<32x1xf32>
    %11 = arith.divf %9, %10 : vector<32x1xf32>
    %cst_4 = arith.constant 9.99999974E-6 : f32
    %12 = vector.broadcast %cst_4 : f32 to vector<32x1xf32>
    %13 = arith.addf %11, %12 : vector<32x1xf32>
    %14 = math.rsqrt %13 : vector<32x1xf32>
    %15 = vector.broadcast %14 : vector<32x1xf32> to vector<32x32xf32>
    %16 = arith.mulf %6, %15 : vector<32x32xf32>
    %c0_5 = arith.constant 0 : index
    %c0_6 = arith.constant 0 : index
    %17 = vector.load %arg2[%c0_5, %c0_6] : memref<1x32xf32, #tpu.memory_space<vmem>>, vector<1x32xf32>
    %18 = vector.broadcast %17 : vector<1x32xf32> to vector<32x32xf32>
    %19 = arith.mulf %16, %18 : vector<32x32xf32>
    %c0_7 = arith.constant 0 : index
    %c0_8 = arith.constant 0 : index
    %20 = vector.load %arg3[%c0_7, %c0_8] : memref<1x32xf32, #tpu.memory_space<vmem>>, vector<1x32xf32>
    %21 = vector.broadcast %20 : vector<1x32xf32> to vector<32x32xf32>
    %22 = arith.addf %19, %21 : vector<32x32xf32>
    %c0_9 = arith.constant 0 : index
    %c0_10 = arith.constant 0 : index
    %23 = vector.load %arg8[%c0_9, %c0_10] : memref<32x32xf32, #tpu.memory_space<vmem>>, vector<32x32xf32>
    tpu.vector_store %arg8[%c0_9, %c0_10], %22 {strides = array<i32>} : memref<32x32xf32, #tpu.memory_space<vmem>>, vector<32x32xf32>,
    %c0_11 = arith.constant 0 : index
    %c0_12 = arith.constant 0 : index
    %24 = vector.load %arg4[%c0_11, %c0_12] : memref<32x32xf32, #tpu.memory_space<vmem>>, vector<32x32xf32>
    %cst_13 = arith.constant dense<0.000000e+00> : vector<32x32xf32>
    %25 = tpu.matmul %22, %24, %cst_13 {dimension_numbers = #tpu.dot_dimension_numbers<[1], [0], [0], [1], [0, 0, 1, 1], [], []>} : vector<32x32xf32>, vector<32x32xf32>, vector<32x32xf32> -> vector<32x32xf32>
    %c0_14 = arith.constant 0 : index
    %c0_15 = arith.constant 0 : index
    %26 = vector.load %arg5[%c0_14, %c0_15] : memref<1x32xf32, #tpu.memory_space<vmem>>, vector<1x32xf32>
    %27 = vector.broadcast %26 : vector<1x32xf32> to vector<32x32xf32>
    %28 = arith.addf %25, %27 : vector<32x32xf32>
    %c0_16 = arith.constant 0 : index
    %c0_17 = arith.constant 0 : index
    %29 = vector.load %arg9[%c0_16, %c0_17] : memref<32x32xf32, #tpu.memory_space<vmem>>, vector<32x32xf32>
    tpu.vector_store %arg9[%c0_16, %c0_17], %28 {strides = array<i32>} : memref<32x32xf32, #tpu.memory_space<vmem>>, vector<32x32xf32>,
    %c0_18 = arith.constant 0 : index
    %c0_19 = arith.constant 0 : index
    %30 = vector.load %arg6[%c0_18, %c0_19] : memref<32x32xf32, #tpu.memory_space<vmem>>, vector<32x32xf32>
    %cst_20 = arith.constant dense<0.000000e+00> : vector<32x32xf32>
    %31 = tpu.matmul %22, %30, %cst_20 {dimension_numbers = #tpu.dot_dimension_numbers<[1], [0], [0], [1], [0, 0, 1, 1], [], []>} : vector<32x32xf32>, vector<32x32xf32>, vector<32x32xf32> -> vector<32x32xf32>
    %c0_21 = arith.constant 0 : index
    %c0_22 = arith.constant 0 : index
    %32 = vector.load %arg7[%c0_21, %c0_22] : memref<1x32xf32, #tpu.memory_space<vmem>>, vector<1x32xf32>
    %33 = vector.broadcast %32 : vector<1x32xf32> to vector<32x32xf32>
    %34 = arith.addf %31, %33 : vector<32x32xf32>
    %c0_23 = arith.constant 0 : index
    %c0_24 = arith.constant 0 : index
    %35 = vector.load %arg10[%c0_23, %c0_24] : memref<32x32xf32, #tpu.memory_space<vmem>>, vector<32x32xf32>
    tpu.vector_store %arg10[%c0_23, %c0_24], %34 {strides = array<i32>} : memref<32x32xf32, #tpu.memory_space<vmem>>, vector<32x32xf32>,
    return
  }
  func.func @transform_0(%arg0: i32) -> (i32, i32) {
    %c0_i32 = arith.constant 0 : i32
    %c0_i32_0 = arith.constant 0 : i32
    return %arg0, %c0_i32 : i32, i32
  }
  func.func @transform_1(%arg0: i32) -> (i32, i32) {
    %c0_i32 = arith.constant 0 : i32
    %c0_i32_0 = arith.constant 0 : i32
    %c0_i32_1 = arith.constant 0 : i32
    return %c0_i32, %c0_i32_0 : i32, i32
  }
  func.func @transform_2(%arg0: i32) -> (i32, i32) {
    %c0_i32 = arith.constant 0 : i32
    %c0_i32_0 = arith.constant 0 : i32
    %c0_i32_1 = arith.constant 0 : i32
    return %c0_i32, %c0_i32_0 : i32, i32
  }
  func.func @transform_3(%arg0: i32) -> (i32, i32) {
    %c0_i32 = arith.constant 0 : i32
    %c0_i32_0 = arith.constant 0 : i32
    %c0_i32_1 = arith.constant 0 : i32
    return %c0_i32, %c0_i32_0 : i32, i32
  }
  func.func @transform_4(%arg0: i32) -> (i32, i32) {
    %c0_i32 = arith.constant 0 : i32
    %c0_i32_0 = arith.constant 0 : i32
    %c0_i32_1 = arith.constant 0 : i32
    return %c0_i32, %c0_i32_0 : i32, i32
  }
  func.func @transform_5(%arg0: i32) -> (i32, i32) {
    %c0_i32 = arith.constant 0 : i32
    %c0_i32_0 = arith.constant 0 : i32
    %c0_i32_1 = arith.constant 0 : i32
    return %c0_i32, %c0_i32_0 : i32, i32
  }
  func.func @transform_6(%arg0: i32) -> (i32, i32) {
    %c0_i32 = arith.constant 0 : i32
    %c0_i32_0 = arith.constant 0 : i32
    %c0_i32_1 = arith.constant 0 : i32
    return %c0_i32, %c0_i32_0 : i32, i32
  }
  func.func @transform_7(%arg0: i32) -> (i32, i32) {
    %c0_i32 = arith.constant 0 : i32
    %c0_i32_0 = arith.constant 0 : i32
    return %arg0, %c0_i32 : i32, i32
  }
  func.func @transform_8(%arg0: i32) -> (i32, i32) {
    %c0_i32 = arith.constant 0 : i32
    %c0_i32_0 = arith.constant 0 : i32
    return %arg0, %c0_i32 : i32, i32
  }
  func.func @transform_9(%arg0: i32) -> (i32, i32) {
    %c0_i32 = arith.constant 0 : i32
    %c0_i32_0 = arith.constant 0 : i32
    return %arg0, %c0_i32 : i32, i32
  }
}

module attributes {stable_mosaic.version = 11 : i64} {
  func.func @_bi_attention_kernel(%arg0: i32, %arg1: i32, %arg2: memref<1x1x16x8xf32, #tpu.memory_space<vmem>>, %arg3: memref<1x1x8x8xf32, #tpu.memory_space<vmem>>, %arg4: memref<1x1x16x8xf32, #tpu.memory_space<vmem>>, %arg5: memref<1x1x8x8xf32, #tpu.memory_space<vmem>>, %arg6: memref<1x1x8xf32, #tpu.memory_space<vmem>>, %arg7: memref<1x1x16x8xf32, #tpu.memory_space<vmem>>, %arg8: memref<1x1x8x8xf32, #tpu.memory_space<vmem>>) attributes {dimension_semantics = [#tpu.dimension_semantics<parallel>, #tpu.dimension_semantics<parallel>], iteration_bounds = array<i64: 2, 4>, scalar_prefetch = 0 : i64, scratch_operands = 0 : i64, tpu.core_type = #tpu.core_type<tc>, window_params = [{transform_indices = @transform_0, window_bounds = array<i64: 1, 1, 16, 8>}, {transform_indices = @transform_1, window_bounds = array<i64: 1, 1, 8, 8>}, {transform_indices = @transform_2, window_bounds = array<i64: 1, 1, 16, 8>}, {transform_indices = @transform_3, window_bounds = array<i64: 1, 1, 8, 8>}, {transform_indices = @transform_4, window_bounds = array<i64: 1, 1, 8>}, {transform_indices = @transform_5, window_bounds = array<i64: 1, 1, 16, 8>}, {transform_indices = @transform_6, window_bounds = array<i64: 1, 1, 8, 8>}]} {
    %c0 = arith.constant 0 : index
    %c0_0 = arith.constant 0 : index
    %c0_1 = arith.constant 0 : index
    %c0_2 = arith.constant 0 : index
    %0 = vector.load %arg2[%c0, %c0_0, %c0_1, %c0_2] : memref<1x1x16x8xf32, #tpu.memory_space<vmem>>, vector<1x1x16x8xf32>
    %1 = vector.shape_cast %0 : vector<1x1x16x8xf32> to vector<16x8xf32>
    %c0_3 = arith.constant 0 : index
    %c0_4 = arith.constant 0 : index
    %c0_5 = arith.constant 0 : index
    %c0_6 = arith.constant 0 : index
    %2 = vector.load %arg3[%c0_3, %c0_4, %c0_5, %c0_6] : memref<1x1x8x8xf32, #tpu.memory_space<vmem>>, vector<1x1x8x8xf32>
    %3 = vector.shape_cast %2 : vector<1x1x8x8xf32> to vector<8x8xf32>
    %c0_7 = arith.constant 0 : index
    %c0_8 = arith.constant 0 : index
    %c0_9 = arith.constant 0 : index
    %c0_10 = arith.constant 0 : index
    %4 = vector.load %arg4[%c0_7, %c0_8, %c0_9, %c0_10] : memref<1x1x16x8xf32, #tpu.memory_space<vmem>>, vector<1x1x16x8xf32>
    %5 = vector.shape_cast %4 : vector<1x1x16x8xf32> to vector<16x8xf32>
    %c0_11 = arith.constant 0 : index
    %c0_12 = arith.constant 0 : index
    %c0_13 = arith.constant 0 : index
    %c0_14 = arith.constant 0 : index
    %6 = vector.load %arg5[%c0_11, %c0_12, %c0_13, %c0_14] : memref<1x1x8x8xf32, #tpu.memory_space<vmem>>, vector<1x1x8x8xf32>
    %7 = vector.shape_cast %6 : vector<1x1x8x8xf32> to vector<8x8xf32>
    %cst = arith.constant dense<0.000000e+00> : vector<16x8xf32>
    %8 = tpu.matmul %1, %3, %cst {dimension_numbers = #tpu.dot_dimension_numbers<[1], [1], [0], [0], [0, 0, 1, 0], [], []>} : vector<16x8xf32>, vector<8x8xf32>, vector<16x8xf32> -> vector<16x8xf32>
    %cst_15 = arith.constant -5.000000e+04 : f32
    %cst_16 = arith.constant 5.000000e+04 : f32
    %9 = vector.broadcast %cst_15 : f32 to vector<16x8xf32>
    %10 = arith.maximumf %9, %8 : vector<16x8xf32>
    %11 = vector.broadcast %cst_16 : f32 to vector<16x8xf32>
    %12 = arith.minimumf %11, %10 : vector<16x8xf32>
    %cst_17 = arith.constant dense<0xFF800000> : vector<8xf32>
    %13 = vector.multi_reduction <maximumf>, %12, %cst_17 [0] : vector<16x8xf32> to vector<8xf32>
    %14 = vector.shape_cast %13 : vector<8xf32> to vector<1x8xf32>
    %15 = vector.broadcast %14 : vector<1x8xf32> to vector<16x8xf32>
    %16 = arith.subf %12, %15 : vector<16x8xf32>
    %cst_18 = arith.constant -5.000000e+04 : f32
    %cst_19 = arith.constant 5.000000e+04 : f32
    %17 = vector.broadcast %cst_18 : f32 to vector<16x8xf32>
    %18 = arith.maximumf %17, %16 : vector<16x8xf32>
    %19 = vector.broadcast %cst_19 : f32 to vector<16x8xf32>
    %20 = arith.minimumf %19, %18 : vector<16x8xf32>
    %21 = math.exp %20 : vector<16x8xf32>
    %cst_20 = arith.constant dense<0.000000e+00> : vector<8xf32>
    %22 = vector.multi_reduction <add>, %21, %cst_20 [0] : vector<16x8xf32> to vector<8xf32>
    %23 = vector.shape_cast %22 : vector<8xf32> to vector<1x8xf32>
    %24 = vector.broadcast %23 : vector<1x8xf32> to vector<16x8xf32>
    %25 = arith.divf %21, %24 : vector<16x8xf32>
    %cst_21 = arith.constant dense<0.000000e+00> : vector<8x8xf32>
    %26 = tpu.matmul %25, %5, %cst_21 {dimension_numbers = #tpu.dot_dimension_numbers<[0], [0], [1], [1], [0, 1, 1, 1], [], []>} : vector<16x8xf32>, vector<16x8xf32>, vector<8x8xf32> -> vector<8x8xf32>
    %c0_22 = arith.constant 0 : index
    %c0_23 = arith.constant 0 : index
    %c0_24 = arith.constant 0 : index
    %27 = vector.load %arg6[%c0_22, %c0_23, %c0_24] : memref<1x1x8xf32, #tpu.memory_space<vmem>>, vector<1x1x8xf32>
    %28 = vector.shape_cast %27 : vector<1x1x8xf32> to vector<1x8xf32>
    %cst_25 = arith.constant 0.000000e+00 : f32
    %29 = vector.broadcast %cst_25 : f32 to vector<1x8xf32>
    %30 = arith.cmpf oeq, %28, %29 : vector<1x8xf32>
    %cst_26 = arith.constant -9.000000e+15 : f32
    %31 = vector.broadcast %cst_26 : f32 to vector<1x8xf32>
    %32 = arith.select %30, %31, %28 : vector<1x8xi1>, vector<1x8xf32>
    %33 = vector.broadcast %32 : vector<1x8xf32> to vector<16x8xf32>
    %34 = arith.addf %12, %33 : vector<16x8xf32>
    %cst_27 = arith.constant dense<0xFF800000> : vector<16xf32>
    %35 = vector.multi_reduction <maximumf>, %34, %cst_27 [1] : vector<16x8xf32> to vector<16xf32>
    %36 = vector.shape_cast %35 : vector<16xf32> to vector<16x1xf32>
    %37 = vector.broadcast %36 : vector<16x1xf32> to vector<16x8xf32>
    %38 = arith.subf %34, %37 : vector<16x8xf32>
    %39 = math.exp %38 : vector<16x8xf32>
    %cst_28 = arith.constant dense<0.000000e+00> : vector<16xf32>
    %40 = vector.multi_reduction <add>, %39, %cst_28 [1] : vector<16x8xf32> to vector<16xf32>
    %41 = vector.shape_cast %40 : vector<16xf32> to vector<16x1xf32>
    %42 = vector.broadcast %41 : vector<16x1xf32> to vector<16x8xf32>
    %43 = arith.divf %39, %42 : vector<16x8xf32>
    %cst_29 = arith.constant dense<0.000000e+00> : vector<16x8xf32>
    %44 = tpu.matmul %43, %7, %cst_29 {dimension_numbers = #tpu.dot_dimension_numbers<[1], [0], [0], [1], [0, 0, 1, 1], [], []>} : vector<16x8xf32>, vector<8x8xf32>, vector<16x8xf32> -> vector<16x8xf32>
    %c0_30 = arith.constant 0 : index
    %c0_31 = arith.constant 0 : index
    %c0_32 = arith.constant 0 : index
    %c0_33 = arith.constant 0 : index
    %45 = vector.load %arg7[%c0_30, %c0_31, %c0_32, %c0_33] : memref<1x1x16x8xf32, #tpu.memory_space<vmem>>, vector<1x1x16x8xf32>
    %46 = vector.shape_cast %45 : vector<1x1x16x8xf32> to vector<16x8xf32>
    %47 = vector.shape_cast %44 : vector<16x8xf32> to vector<1x1x16x8xf32>
    tpu.vector_store %arg7[%c0_30, %c0_31, %c0_32, %c0_33], %47 {strides = array<i32>} : memref<1x1x16x8xf32, #tpu.memory_space<vmem>>, vector<1x1x16x8xf32>,
    %c0_34 = arith.constant 0 : index
    %c0_35 = arith.constant 0 : index
    %c0_36 = arith.constant 0 : index
    %c0_37 = arith.constant 0 : index
    %48 = vector.load %arg8[%c0_34, %c0_35, %c0_36, %c0_37] : memref<1x1x8x8xf32, #tpu.memory_space<vmem>>, vector<1x1x8x8xf32>
    %49 = vector.shape_cast %48 : vector<1x1x8x8xf32> to vector<8x8xf32>
    %50 = vector.shape_cast %26 : vector<8x8xf32> to vector<1x1x8x8xf32>
    tpu.vector_store %arg8[%c0_34, %c0_35, %c0_36, %c0_37], %50 {strides = array<i32>} : memref<1x1x8x8xf32, #tpu.memory_space<vmem>>, vector<1x1x8x8xf32>,
    return
  }
  func.func @transform_0(%arg0: i32, %arg1: i32) -> (i32, i32, i32, i32) {
    %c0_i32 = arith.constant 0 : i32
    %c0_i32_0 = arith.constant 0 : i32
    %c0_i32_1 = arith.constant 0 : i32
    return %arg0, %arg1, %c0_i32, %c0_i32_0 : i32, i32, i32, i32
  }
  func.func @transform_1(%arg0: i32, %arg1: i32) -> (i32, i32, i32, i32) {
    %c0_i32 = arith.constant 0 : i32
    %c0_i32_0 = arith.constant 0 : i32
    %c0_i32_1 = arith.constant 0 : i32
    return %arg0, %arg1, %c0_i32, %c0_i32_0 : i32, i32, i32, i32
  }
  func.func @transform_2(%arg0: i32, %arg1: i32) -> (i32, i32, i32, i32) {
    %c0_i32 = arith.constant 0 : i32
    %c0_i32_0 = arith.constant 0 : i32
    %c0_i32_1 = arith.constant 0 : i32
    return %arg0, %arg1, %c0_i32, %c0_i32_0 : i32, i32, i32, i32
  }
  func.func @transform_3(%arg0: i32, %arg1: i32) -> (i32, i32, i32, i32) {
    %c0_i32 = arith.constant 0 : i32
    %c0_i32_0 = arith.constant 0 : i32
    %c0_i32_1 = arith.constant 0 : i32
    return %arg0, %arg1, %c0_i32, %c0_i32_0 : i32, i32, i32, i32
  }
  func.func @transform_4(%arg0: i32, %arg1: i32) -> (i32, i32, i32) {
    %c0_i32 = arith.constant 0 : i32
    %c0_i32_0 = arith.constant 0 : i32
    %c0_i32_1 = arith.constant 0 : i32
    return %arg0, %c0_i32, %c0_i32_0 : i32, i32, i32
  }
  func.func @transform_5(%arg0: i32, %arg1: i32) -> (i32, i32, i32, i32) {
    %c0_i32 = arith.constant 0 : i32
    %c0_i32_0 = arith.constant 0 : i32
    %c0_i32_1 = arith.constant 0 : i32
    return %arg0, %arg1, %c0_i32, %c0_i32_0 : i32, i32, i32, i32
  }
  func.func @transform_6(%arg0: i32, %arg1: i32) -> (i32, i32, i32, i32) {
    %c0_i32 = arith.constant 0 : i32
    %c0_i32_0 = arith.constant 0 : i32
    %c0_i32_1 = arith.constant 0 : i32
    return %arg0, %arg1, %c0_i32, %c0_i32_0 : i32, i32, i32, i32
  }
}

module attributes {stable_mosaic.version = 11 : i64} {
  func.func @_linear_residual_kernel(%arg0: i32, %arg1: memref<16x32xf32, #tpu.memory_space<vmem>>, %arg2: memref<32x32xf32, #tpu.memory_space<vmem>>, %arg3: memref<1x32xf32, #tpu.memory_space<vmem>>, %arg4: memref<16x32xf32, #tpu.memory_space<vmem>>, %arg5: memref<16x32xf32, #tpu.memory_space<vmem>>) attributes {dimension_semantics = [#tpu.dimension_semantics<parallel>], iteration_bounds = array<i64: 1>, scalar_prefetch = 0 : i64, scratch_operands = 0 : i64, tpu.core_type = #tpu.core_type<tc>, window_params = [{transform_indices = @transform_0, window_bounds = array<i64: 16, 32>}, {pipeline_mode = #tpu.pipeline_mode<synchronous>, transform_indices = @transform_1, window_bounds = array<i64: 32, 32>}, {pipeline_mode = #tpu.pipeline_mode<synchronous>, transform_indices = @transform_2, window_bounds = array<i64: 1, 32>}, {transform_indices = @transform_3, window_bounds = array<i64: 16, 32>}, {transform_indices = @transform_4, window_bounds = array<i64: 16, 32>}]} {
    %c0 = arith.constant 0 : index
    %c0_0 = arith.constant 0 : index
    %0 = vector.load %arg4[%c0, %c0_0] : memref<16x32xf32, #tpu.memory_space<vmem>>, vector<16x32xf32>
    %c0_1 = arith.constant 0 : index
    %c0_2 = arith.constant 0 : index
    %1 = vector.load %arg1[%c0_1, %c0_2] : memref<16x32xf32, #tpu.memory_space<vmem>>, vector<16x32xf32>
    %c0_3 = arith.constant 0 : index
    %c0_4 = arith.constant 0 : index
    %2 = vector.load %arg2[%c0_3, %c0_4] : memref<32x32xf32, #tpu.memory_space<vmem>>, vector<32x32xf32>
    %cst = arith.constant dense<0.000000e+00> : vector<16x32xf32>
    %3 = tpu.matmul %1, %2, %cst {dimension_numbers = #tpu.dot_dimension_numbers<[1], [0], [0], [1], [0, 0, 1, 1], [], []>} : vector<16x32xf32>, vector<32x32xf32>, vector<16x32xf32> -> vector<16x32xf32>
    %4 = arith.addf %0, %3 : vector<16x32xf32>
    %c0_5 = arith.constant 0 : index
    %c0_6 = arith.constant 0 : index
    %5 = vector.load %arg3[%c0_5, %c0_6] : memref<1x32xf32, #tpu.memory_space<vmem>>, vector<1x32xf32>
    %6 = vector.broadcast %5 : vector<1x32xf32> to vector<16x32xf32>
    %7 = arith.addf %4, %6 : vector<16x32xf32>
    %c0_7 = arith.constant 0 : index
    %c0_8 = arith.constant 0 : index
    %8 = vector.load %arg5[%c0_7, %c0_8] : memref<16x32xf32, #tpu.memory_space<vmem>>, vector<16x32xf32>
    tpu.vector_store %arg5[%c0_7, %c0_8], %7 {strides = array<i32>} : memref<16x32xf32, #tpu.memory_space<vmem>>, vector<16x32xf32>,
    return
  }
  func.func @transform_0(%arg0: i32) -> (i32, i32) {
    %c0_i32 = arith.constant 0 : i32
    %c0_i32_0 = arith.constant 0 : i32
    return %arg0, %c0_i32 : i32, i32
  }
  func.func @transform_1(%arg0: i32) -> (i32, i32) {
    %c0_i32 = arith.constant 0 : i32
    %c0_i32_0 = arith.constant 0 : i32
    %c0_i32_1 = arith.constant 0 : i32
    return %c0_i32, %c0_i32_0 : i32, i32
  }
  func.func @transform_2(%arg0: i32) -> (i32, i32) {
    %c0_i32 = arith.constant 0 : i32
    %c0_i32_0 = arith.constant 0 : i32
    %c0_i32_1 = arith.constant 0 : i32
    return %c0_i32, %c0_i32_0 : i32, i32
  }
  func.func @transform_3(%arg0: i32) -> (i32, i32) {
    %c0_i32 = arith.constant 0 : i32
    %c0_i32_0 = arith.constant 0 : i32
    return %arg0, %c0_i32 : i32, i32
  }
  func.func @transform_4(%arg0: i32) -> (i32, i32) {
    %c0_i32 = arith.constant 0 : i32
    %c0_i32_0 = arith.constant 0 : i32
    return %arg0, %c0_i32 : i32, i32
  }
}

module attributes {stable_mosaic.version = 11 : i64} {
  func.func @_linear_residual_kernel(%arg0: i32, %arg1: memref<32x32xf32, #tpu.memory_space<vmem>>, %arg2: memref<32x32xf32, #tpu.memory_space<vmem>>, %arg3: memref<1x32xf32, #tpu.memory_space<vmem>>, %arg4: memref<32x32xf32, #tpu.memory_space<vmem>>, %arg5: memref<32x32xf32, #tpu.memory_space<vmem>>) attributes {dimension_semantics = [#tpu.dimension_semantics<parallel>], iteration_bounds = array<i64: 1>, scalar_prefetch = 0 : i64, scratch_operands = 0 : i64, tpu.core_type = #tpu.core_type<tc>, window_params = [{transform_indices = @transform_0, window_bounds = array<i64: 32, 32>}, {pipeline_mode = #tpu.pipeline_mode<synchronous>, transform_indices = @transform_1, window_bounds = array<i64: 32, 32>}, {pipeline_mode = #tpu.pipeline_mode<synchronous>, transform_indices = @transform_2, window_bounds = array<i64: 1, 32>}, {transform_indices = @transform_3, window_bounds = array<i64: 32, 32>}, {transform_indices = @transform_4, window_bounds = array<i64: 32, 32>}]} {
    %c0 = arith.constant 0 : index
    %c0_0 = arith.constant 0 : index
    %0 = vector.load %arg4[%c0, %c0_0] : memref<32x32xf32, #tpu.memory_space<vmem>>, vector<32x32xf32>
    %c0_1 = arith.constant 0 : index
    %c0_2 = arith.constant 0 : index
    %1 = vector.load %arg1[%c0_1, %c0_2] : memref<32x32xf32, #tpu.memory_space<vmem>>, vector<32x32xf32>
    %c0_3 = arith.constant 0 : index
    %c0_4 = arith.constant 0 : index
    %2 = vector.load %arg2[%c0_3, %c0_4] : memref<32x32xf32, #tpu.memory_space<vmem>>, vector<32x32xf32>
    %cst = arith.constant dense<0.000000e+00> : vector<32x32xf32>
    %3 = tpu.matmul %1, %2, %cst {dimension_numbers = #tpu.dot_dimension_numbers<[1], [0], [0], [1], [0, 0, 1, 1], [], []>} : vector<32x32xf32>, vector<32x32xf32>, vector<32x32xf32> -> vector<32x32xf32>
    %4 = arith.addf %0, %3 : vector<32x32xf32>
    %c0_5 = arith.constant 0 : index
    %c0_6 = arith.constant 0 : index
    %5 = vector.load %arg3[%c0_5, %c0_6] : memref<1x32xf32, #tpu.memory_space<vmem>>, vector<1x32xf32>
    %6 = vector.broadcast %5 : vector<1x32xf32> to vector<32x32xf32>
    %7 = arith.addf %4, %6 : vector<32x32xf32>
    %c0_7 = arith.constant 0 : index
    %c0_8 = arith.constant 0 : index
    %8 = vector.load %arg5[%c0_7, %c0_8] : memref<32x32xf32, #tpu.memory_space<vmem>>, vector<32x32xf32>
    tpu.vector_store %arg5[%c0_7, %c0_8], %7 {strides = array<i32>} : memref<32x32xf32, #tpu.memory_space<vmem>>, vector<32x32xf32>,
    return
  }
  func.func @transform_0(%arg0: i32) -> (i32, i32) {
    %c0_i32 = arith.constant 0 : i32
    %c0_i32_0 = arith.constant 0 : i32
    return %arg0, %c0_i32 : i32, i32
  }
  func.func @transform_1(%arg0: i32) -> (i32, i32) {
    %c0_i32 = arith.constant 0 : i32
    %c0_i32_0 = arith.constant 0 : i32
    %c0_i32_1 = arith.constant 0 : i32
    return %c0_i32, %c0_i32_0 : i32, i32
  }
  func.func @transform_2(%arg0: i32) -> (i32, i32) {
    %c0_i32 = arith.constant 0 : i32
    %c0_i32_0 = arith.constant 0 : i32
    %c0_i32_1 = arith.constant 0 : i32
    return %c0_i32, %c0_i32_0 : i32, i32
  }
  func.func @transform_3(%arg0: i32) -> (i32, i32) {
    %c0_i32 = arith.constant 0 : i32
    %c0_i32_0 = arith.constant 0 : i32
    return %arg0, %c0_i32 : i32, i32
  }
  func.func @transform_4(%arg0: i32) -> (i32, i32) {
    %c0_i32 = arith.constant 0 : i32
    %c0_i32_0 = arith.constant 0 : i32
    return %arg0, %c0_i32 : i32, i32
  }
}

</mosaic_0001>

<bundles_post_ra>
// kernel: bi_attention_block_forward.6
= control target key start
LH: loop header
LB: loop body
LE: loop exit
PB: predicated region body
PF: predicated region fallthrough
CT: control target
= control target key end

     0   :  { %vm31_vm0 = vcmask 261120   ;;  %s459_s0 = inlined_call_operand.vmem [shape: f32[16,32], index: 0, kind: input, shape index: {}]   ;;  %s460_s3 = inlined_call_operand.vmem [shape: f32[32,32], index: 3, kind: input, shape index: {}]   ;;  %s461_s5 = inlined_call_operand.vmem [shape: f32[32,32], index: 5, kind: input, shape index: {}]   ;;  %s462_s1 = inlined_call_operand.vmem [shape: f32[1,32], index: 1, kind: input, shape index: {}]   ;;  %s463_s2 = inlined_call_operand.vmem [shape: f32[1,32], index: 2, kind: input, shape index: {}]   ;;  %s464_s7 = inlined_call_operand.vmem [shape: f32[16,32], index: 7, kind: output, shape index: {0}]   ;;  %s465_s4 = inlined_call_operand.vmem [shape: f32[1,32], index: 4, kind: input, shape index: {}]   ;;  %s466_s6 = inlined_call_operand.vmem [shape: f32[1,32], index: 6, kind: input, shape index: {}]   ;;  %s467_s8 = inlined_call_operand.vmem [shape: f32[16,32], index: 8, kind: output, shape index: {1}]   ;;  %s468_s9 = inlined_call_operand.vmem [shape: f32[16,32], index: 9, kind: output, shape index: {2}]  }
   0x1   :  { %v29_v0 = vld [vmem:[%s459_s0] sm:$0xff]  ;;  %v30_v1 = vld [vmem:[%s459_s0 + $0x8] sm:$0xff]  ;;  %v81_v19 = vld [vmem:[%s460_s3 + $0x10] sm:$0xff] }
   0x2   :  { %v32_v2 = vsel %vm31_vm0, %v29_v0, 0.0  ;;  %v35_v3 = vsel %vm31_vm0, %v30_v1, 0.0  ;;  %v79_v14 = vld [vmem:[%s460_s3] sm:$0xff]  ;;  %v80_v15 = vld [vmem:[%s460_s3 + $0x8] sm:$0xff]  ;;  %v82_v20 = vld [vmem:[%s460_s3 + $0x18] sm:$0xff] }
   0x3   :  { %33 = vadd.xlane.f32.xlu0 %v32_v2  ;;  %v173_v16 = vld [vmem:[%s461_s5] sm:$0xff]  ;;  %v315_v17 = vpack.c.bf16 %v80_v15, %v79_v14  ;;  %v174_v18 = vld [vmem:[%s461_s5 + $0x8] sm:$0xff]  ;;  %v319_v22 = vpack.c.bf16 %v82_v20, %v81_v19  ;;  %v175_v23 = vld [vmem:[%s461_s5 + $0x10] sm:$0xff] }
   0x4   :  { %v323_v21 = vpack.c.bf16 %v174_v18, %v173_v16  ;;  %v176_v24 = vld [vmem:[%s461_s5 + $0x18] sm:$0xff]  ;;  %v273_v33 = vld [vmem:[%s462_s1] ss:$0 sm:$0xff] }
   0x5   :  { %316 = vmatprep.subr.bf16.mxu0 %v315_v17  ;;  %v327_v25 = vpack.c.bf16 %v176_v24, %v175_v23  ;;  %v274_v35 = vld [vmem:[%s463_s2] ss:$0 sm:$0xff] }
   0x6   :  { %324 = vmatprep.subr.bf16.mxu1 %v323_v21  ;;  %318 = vmatpush3.bf16.msra.mxu0 %v315_v17  ;;  %v275_v42 = vld [vmem:[%s465_s4] ss:$0 sm:$0xff] }
   0x7   :  { %36 = vadd.xlane.f32.xlu0 %v35_v3  ;;  %326 = vmatpush3.bf16.msra.mxu1 %v323_v21  ;;  %v278_v43 = vld [vmem:[%s466_s6] ss:$0 sm:$0xff] }
   0x8   :  { %320 = vmatprep.subr.bf16.mxu0 %v319_v22  ;;  %328 = vmatprep.subr.bf16.mxu1 %v327_v25 }
   0xa   :  { %322 = vmatpush3.bf16.msra.mxu0 %v319_v22 }
   0xb   :  { %330 = vmatpush3.bf16.msra.mxu1 %v327_v25 }
  0x90   :  { %v34_v4 = vpop.xlane.xlu0 %33 }
  0x91   :  { %v39_v5 = vmul.f32 0.03125, %v34_v4 }
  0x93   :  { %v41_v6 = vsub.f32 %v29_v0, %v39_v5 }
  0x94   :  { %v37_v7 = vpop.xlane.xlu0 %36 }
  0x95   :  { %v40_v8 = vmul.f32 0.03125, %v37_v7  ;;  %v43_v9 = vmul.f32 %v41_v6, %v41_v6 }
  0x97   :  { %v42_v10 = vsub.f32 %v30_v1, %v40_v8  ;;  %v45_v11 = vsel %vm31_vm0, %v43_v9, 0.0 }
  0x98   :  { %46 = vadd.xlane.f32.xlu1 %v45_v11 }
  0x99   :  { %v44_v12 = vmul.f32 %v42_v10, %v42_v10 }
  0x9b   :  { %v48_v13 = vsel %vm31_vm0, %v44_v12, 0.0 }
  0x9c   :  { %49 = vadd.xlane.f32.xlu1 %v48_v13 }
 0x125   :  { %v47_v26 = vpop.xlane.xlu1 %46 }
 0x126   :  { %v51_v27 = vmul.f32 0.03125, %v47_v26 }
 0x128   :  { %v53_v28 = vadd.f32 1e-05, %v51_v27 }
 0x129   :  { %v50_v29 = vpop.xlane.xlu1 %49 }
 0x12a   :  { %331 = vrsqrt.f32 %v53_v28  ;;  %v52_v30 = vmul.f32 0.03125, %v50_v29 }
 0x12c   :  { %v54_v31 = vadd.f32 1e-05, %v52_v30 }
 0x12e   :  { %333 = vrsqrt.f32 %v54_v31 }
 0x134   :  { %v332_v32 = vpop.eup %331 }
 0x135   :  { %v57_v34 = vmul.f32 %v332_v32, %v41_v6 }
 0x137   :  { %v66_v36 = vmul.f32 %v273_v33, %v57_v34 }
 0x138   :  { %v334_v37 = vpop.eup %333 }
 0x139   :  { %v58_v38 = vmul.f32 %v334_v37, %v42_v10  ;;  %v75_v39 = vadd.f32 %v274_v35, %v66_v36 }
 0x13b   :  { %v67_v40 = vmul.f32 %v273_v33, %v58_v38  ;;  %77 = vst.msk [vmem:[%s464_s7] sm:$0xff] %vm31_vm0, %v75_v39  ;;  %301 = vmatprep.mubr.msk.f32.mxu0 %vm31_vm0, %v75_v39  ;;  %312 = vmatprep.mubr.msk.f32.mxu1 %vm31_vm0, %v75_v39 }
 0x13d   :  { %v76_v41 = vadd.f32 %v274_v35, %v67_v40 }
 0x13f   :  { %78 = vst.msk [vmem:[%s464_s7 + $0x8] sm:$0xff] %vm31_vm0, %v76_v41  ;;  %302 = vmatmul.mubr.msk.f32.vlgmr.msra.gmra.mrb[0].mxu0 %vm31_vm0, %v76_v41  ;;  %313 = vmatmul.mubr.msk.f32.vlgmr.msra.gmra.mrb[0].mxu1 %vm31_vm0, %v76_v41 }
 0x212   :  { %v303_v44 = vpop.f32.mrb[0].mxu0  ;;  %v314_v45 = vpop.f32.mrb[0].mxu1 }
 0x213   :  { %v168_v46 = vadd.f32 %v303_v44, %v275_v42  ;;  %v256_v47 = vadd.f32 %v314_v45, %v278_v43  ;;  %v162_v48 = vpop.f32.mrb[1].mxu0  ;;  %v250_v49 = vpop.f32.mrb[1].mxu1 }
 0x214   :  { %v163_v50 = vadd.f32 %v275_v42, %v162_v48  ;;  %v251_v51 = vadd.f32 %v278_v43, %v250_v49 }
 0x215   :  { %172 = vst.msk [vmem:[%s467_s8 + $0x8] sm:$0xff] %vm31_vm0, %v168_v46  ;;  %260 = vst.msk [vmem:[%s468_s9 + $0x8] sm:$0xff] %vm31_vm0, %v256_v47 }
 0x216   :  { %171 = vst.msk [vmem:[%s467_s8] sm:$0xff] %vm31_vm0, %v163_v50  ;;  %259 = vst.msk [vmem:[%s468_s9] sm:$0xff] %vm31_vm0, %v251_v51 }

// kernel: bi_attention_block_forward.5
= control target key start
LH: loop header
LB: loop body
LE: loop exit
PB: predicated region body
PF: predicated region fallthrough
CT: control target
= control target key end

     0   :  { %vm33_vm0 = vcmask 261120   ;;  %s589_s0 = inlined_call_operand.vmem [shape: f32[32,32], index: 0, kind: input, shape index: {}]   ;;  %s590_s3 = inlined_call_operand.vmem [shape: f32[32,32], index: 3, kind: input, shape index: {}]   ;;  %s591_s5 = inlined_call_operand.vmem [shape: f32[32,32], index: 5, kind: input, shape index: {}]   ;;  %s592_s1 = inlined_call_operand.vmem [shape: f32[1,32], index: 1, kind: input, shape index: {}]   ;;  %s593_s2 = inlined_call_operand.vmem [shape: f32[1,32], index: 2, kind: input, shape index: {}]   ;;  %s594_s7 = inlined_call_operand.vmem [shape: f32[32,32], index: 7, kind: output, shape index: {0}]   ;;  %s595_s4 = inlined_call_operand.vmem [shape: f32[1,32], index: 4, kind: input, shape index: {}]   ;;  %s596_s6 = inlined_call_operand.vmem [shape: f32[1,32], index: 6, kind: input, shape index: {}]   ;;  %s597_s8 = inlined_call_operand.vmem [shape: f32[32,32], index: 8, kind: output, shape index: {1}]   ;;  %s598_s9 = inlined_call_operand.vmem [shape: f32[32,32], index: 9, kind: output, shape index: {2}]  }
   0x1   :  { %v29_v0 = vld [vmem:[%s589_s0] sm:$0xff]  ;;  %v31_v1 = vld [vmem:[%s589_s0 + $0x10] sm:$0xff]  ;;  %v30_v2 = vld [vmem:[%s589_s0 + $0x8] sm:$0xff] }
   0x2   :  { %v34_v3 = vsel %vm33_vm0, %v29_v0, 0.0  ;;  %v40_v4 = vsel %vm33_vm0, %v31_v1, 0.0  ;;  %v32_v5 = vld [vmem:[%s589_s0 + $0x18] sm:$0xff]  ;;  %v37_v6 = vsel %vm33_vm0, %v30_v2, 0.0  ;;  %v113_v28 = vld [vmem:[%s590_s3] sm:$0xff]  ;;  %v114_v29 = vld [vmem:[%s590_s3 + $0x8] sm:$0xff] }
   0x3   :  { %35 = vadd.xlane.f32.xlu0 %v34_v3  ;;  %41 = vadd.xlane.f32.xlu1 %v40_v4  ;;  %v43_v7 = vsel %vm33_vm0, %v32_v5, 0.0  ;;  %v225_v30 = vld [vmem:[%s591_s5] sm:$0xff]  ;;  %v393_v31 = vpack.c.bf16 %v114_v29, %v113_v28  ;;  %v226_v32 = vld [vmem:[%s591_s5 + $0x8] sm:$0xff]  ;;  %v115_v33 = vld [vmem:[%s590_s3 + $0x10] sm:$0xff] }
   0x4   :  { %v116_v34 = vld [vmem:[%s590_s3 + $0x18] sm:$0xff]  ;;  %v401_v35 = vpack.c.bf16 %v226_v32, %v225_v30  ;;  %v227_v37 = vld [vmem:[%s591_s5 + $0x10] sm:$0xff]  ;;  %v337_v53 = vld [vmem:[%s592_s1] ss:$0 sm:$0xff] }
   0x5   :  { %v397_v36 = vpack.c.bf16 %v116_v34, %v115_v33  ;;  %394 = vmatprep.subr.bf16.mxu0 %v393_v31  ;;  %v228_v38 = vld [vmem:[%s591_s5 + $0x18] sm:$0xff]  ;;  %v338_v55 = vld [vmem:[%s593_s2] ss:$0 sm:$0xff] }
   0x6   :  { %402 = vmatprep.subr.bf16.mxu1 %v401_v35  ;;  %396 = vmatpush3.bf16.msra.mxu0 %v393_v31  ;;  %v405_v39 = vpack.c.bf16 %v228_v38, %v227_v37 }
   0x7   :  { %38 = vadd.xlane.f32.xlu0 %v37_v6  ;;  %44 = vadd.xlane.f32.xlu1 %v43_v7  ;;  %v339_v6 = vld [vmem:[%s595_s4] ss:$0 sm:$0xff] }
   0x8   :  { %404 = vmatpush3.bf16.msra.mxu1 %v401_v35  ;;  %398 = vmatprep.subr.bf16.mxu0 %v397_v36  ;;  %v344_v7 = vld [vmem:[%s596_s6] ss:$0 sm:$0xff] }
   0x9   :  { %406 = vmatprep.subr.bf16.mxu1 %v405_v39 }
   0xa   :  { %400 = vmatpush3.bf16.msra.mxu0 %v397_v36 }
   0xc   :  { %408 = vmatpush3.bf16.msra.mxu1 %v405_v39 }
  0x90   :  { %v36_v8 = vpop.xlane.xlu0 %35  ;;  %v42_v9 = vpop.xlane.xlu1 %41 }
  0x91   :  { %v47_v10 = vmul.f32 0.03125, %v36_v8  ;;  %v49_v11 = vmul.f32 0.03125, %v42_v9 }
  0x93   :  { %v51_v12 = vsub.f32 %v29_v0, %v47_v10  ;;  %v483_v13 = vsub.f32 %v31_v1, %v49_v11 }
  0x94   :  { %v39_v14 = vpop.xlane.xlu0 %38  ;;  %v45_v15 = vpop.xlane.xlu1 %44 }
  0x95   :  { %v48_v16 = vmul.f32 0.03125, %v39_v14  ;;  %v50_v17 = vmul.f32 0.03125, %v45_v15  ;;  %v55_v18 = vmul.f32 %v51_v12, %v51_v12  ;;  %v57_v19 = vmul.f32 %v483_v13, %v483_v13 }
  0x97   :  { %v52_v20 = vsub.f32 %v30_v2, %v48_v16  ;;  %v487_v21 = vsub.f32 %v32_v5, %v50_v17  ;;  %v59_v22 = vsel %vm33_vm0, %v55_v18, 0.0  ;;  %v65_v23 = vsel %vm33_vm0, %v57_v19, 0.0 }
  0x98   :  { %60 = vadd.xlane.f32.xlu0 %v59_v22 }
  0x99   :  { %v56_v24 = vmul.f32 %v52_v20, %v52_v20  ;;  %v58_v25 = vmul.f32 %v487_v21, %v487_v21 }
  0x9b   :  { %v62_v26 = vsel %vm33_vm0, %v56_v24, 0.0  ;;  %v68_v27 = vsel %vm33_vm0, %v58_v25, 0.0 }
  0x9c   :  { %66 = vadd.xlane.f32.xlu0 %v65_v23  ;;  %63 = vadd.xlane.f32.xlu1 %v62_v26 }
  0xa0   :  { %69 = vadd.xlane.f32.xlu1 %v68_v27 }
 0x125   :  { %v61_v40 = vpop.xlane.xlu0 %60 }
 0x126   :  { %v71_v41 = vmul.f32 0.03125, %v61_v40 }
 0x128   :  { %v75_v42 = vadd.f32 1e-05, %v71_v41 }
 0x129   :  { %v64_v43 = vpop.xlane.xlu1 %63  ;;  %v67_v44 = vpop.xlane.xlu0 %66 }
 0x12a   :  { %409 = vrsqrt.f32 %v75_v42  ;;  %v72_v45 = vmul.f32 0.03125, %v64_v43  ;;  %v73_v46 = vmul.f32 0.03125, %v67_v44 }
 0x12c   :  { %v76_v47 = vadd.f32 1e-05, %v72_v45  ;;  %v77_v48 = vadd.f32 1e-05, %v73_v46 }
 0x12d   :  { %v70_v49 = vpop.xlane.xlu1 %69 }
 0x12e   :  { %411 = vrsqrt.f32 %v76_v47  ;;  %v74_v50 = vmul.f32 0.03125, %v70_v49 }
 0x12f   :  { %413 = vrsqrt.f32 %v77_v48 }
 0x130   :  { %v78_v51 = vadd.f32 1e-05, %v74_v50 }
 0x132   :  { %415 = vrsqrt.f32 %v78_v51 }
 0x134   :  { %v410_v52 = vpop.eup %409 }
 0x135   :  { %v83_v54 = vmul.f32 %v410_v52, %v51_v12 }
 0x137   :  { %v94_v56 = vmul.f32 %v337_v53, %v83_v54 }
 0x138   :  { %v412_v57 = vpop.eup %411 }
 0x139   :  { %v414_v58 = vpop.eup %413  ;;  %v105_v59 = vadd.f32 %v338_v55, %v94_v56  ;;  %v84_v60 = vmul.f32 %v412_v57, %v52_v20 }
 0x13a   :  { %v85_v61 = vmul.f32 %v414_v58, %v483_v13 }
 0x13b   :  { %109 = vst.msk [vmem:[%s594_s7] sm:$0xff] %vm33_vm0, %v105_v59  ;;  %373 = vmatprep.mubr.msk.f32.mxu0 %vm33_vm0, %v105_v59  ;;  %387 = vmatprep.mubr.msk.f32.mxu1 %vm33_vm0, %v105_v59  ;;  %v95_v62 = vmul.f32 %v337_v53, %v84_v60 }
 0x13c   :  { %v416_v63 = vpop.eup %415  ;;  %v96_v0 = vmul.f32 %v337_v53, %v85_v61 }
 0x13d   :  { %v106_v1 = vadd.f32 %v338_v55, %v95_v62  ;;  %v86_v2 = vmul.f32 %v416_v63, %v487_v21 }
 0x13e   :  { %v107_v3 = vadd.f32 %v338_v55, %v96_v0 }
 0x13f   :  { %110 = vst.msk [vmem:[%s594_s7 + $0x8] sm:$0xff] %vm33_vm0, %v106_v1  ;;  %374 = vmatmul.mubr.msk.f32.vlgmr.msra.gmra.mrb[0].mxu0 %vm33_vm0, %v106_v1  ;;  %388 = vmatmul.mubr.msk.f32.vlgmr.msra.gmra.mrb[0].mxu1 %vm33_vm0, %v106_v1  ;;  %v97_v4 = vmul.f32 %v337_v53, %v86_v2 }
 0x140   :  { %111 = vst.msk [vmem:[%s594_s7 + $0x10] sm:$0xff] %vm33_vm0, %v107_v3  ;;  %376 = vmatprep.mubr.msk.f32.mxu0 %vm33_vm0, %v107_v3  ;;  %390 = vmatprep.mubr.msk.f32.mxu1 %vm33_vm0, %v107_v3 }
 0x141   :  { %v108_v5 = vadd.f32 %v338_v55, %v97_v4 }
 0x143   :  { %112 = vst.msk [vmem:[%s594_s7 + $0x18] sm:$0xff] %vm33_vm0, %v108_v5  ;;  %377 = vmatmul.mubr.msk.f32.gmra.mrb[2].mxu0 %vm33_vm0, %v108_v5  ;;  %391 = vmatmul.mubr.msk.f32.gmra.mrb[2].mxu1 %vm33_vm0, %v108_v5 }
 0x212   :  { %v375_v8 = vpop.f32.mrb[0].mxu0  ;;  %v389_v9 = vpop.f32.mrb[0].mxu1 }
 0x213   :  { %v208_v10 = vadd.f32 %v375_v8, %v339_v6  ;;  %v308_v11 = vadd.f32 %v389_v9, %v344_v7  ;;  %v202_v12 = vpop.f32.mrb[1].mxu0  ;;  %v302_v13 = vpop.f32.mrb[1].mxu1 }
 0x214   :  { %v203_v14 = vadd.f32 %v339_v6, %v202_v12  ;;  %v303_v15 = vadd.f32 %v344_v7, %v302_v13 }
 0x215   :  { %222 = vst.msk [vmem:[%s597_s8 + $0x8] sm:$0xff] %vm33_vm0, %v208_v10  ;;  %322 = vst.msk [vmem:[%s598_s9 + $0x8] sm:$0xff] %vm33_vm0, %v308_v11 }
 0x216   :  { %221 = vst.msk [vmem:[%s597_s8] sm:$0xff] %vm33_vm0, %v203_v14  ;;  %321 = vst.msk [vmem:[%s598_s9] sm:$0xff] %vm33_vm0, %v303_v15  ;;  %v378_v16 = vpop.f32.mrb[2].mxu0  ;;  %v392_v17 = vpop.f32.mrb[2].mxu1 }
 0x217   :  { %v218_v18 = vadd.f32 %v378_v16, %v339_v6  ;;  %v318_v19 = vadd.f32 %v392_v17, %v344_v7  ;;  %v212_v20 = vpop.f32.mrb[3].mxu0  ;;  %v312_v21 = vpop.f32.mrb[3].mxu1 }
 0x218   :  { %v213_v22 = vadd.f32 %v339_v6, %v212_v20  ;;  %v313_v23 = vadd.f32 %v344_v7, %v312_v21 }
 0x219   :  { %224 = vst.msk [vmem:[%s597_s8 + $0x18] sm:$0xff] %vm33_vm0, %v218_v18  ;;  %324 = vst.msk [vmem:[%s598_s9 + $0x18] sm:$0xff] %vm33_vm0, %v318_v19 }
 0x21a   :  { %223 = vst.msk [vmem:[%s597_s8 + $0x10] sm:$0xff] %vm33_vm0, %v213_v22  ;;  %323 = vst.msk [vmem:[%s598_s9 + $0x10] sm:$0xff] %vm33_vm0, %v313_v23 }

// kernel: bi_attention_block_forward.9
= control target key start
LH: loop header
LB: loop body
LE: loop exit
PB: predicated region body
PF: predicated region fallthrough
CT: control target
= control target key end

     0   :  { %vm26_vm0 = vcmask 261120   ;;  %s263_s0 = inlined_call_operand.vmem [shape: f32[16,32], index: 0, kind: input, shape index: {}]   ;;  %s264_s1 = inlined_call_operand.vmem [shape: f32[32,32], index: 1, kind: input, shape index: {}]   ;;  %s265_s2 = inlined_call_operand.vmem [shape: f32[1,32], index: 2, kind: input, shape index: {}]   ;;  %s266_s3 = inlined_call_operand.vmem [shape: f32[16,32], index: 3, kind: input, shape index: {}]   ;;  %s267_s4 = inlined_call_operand.hbm [shape: f32[16,32], index: 4, kind: output, shape index: {}]  }
   0x1   :  { %v22_v0 = vld [vmem:[%s264_s1] sm:$0xff]  ;;  %v23_v1 = vld [vmem:[%s264_s1 + $0x8] sm:$0xff]  ;;  %v24_v2 = vld [vmem:[%s264_s1 + $0x10] sm:$0xff] }
   0x2   :  { %v157_v3 = vpack.c.bf16 %v23_v1, %v22_v0  ;;  %v25_v4 = vld [vmem:[%s264_s1 + $0x18] sm:$0xff]  ;;  %v20_v5 = vld [vmem:[%s263_s0] sm:$0xff] }
   0x3   :  { %v161_v6 = vpack.c.bf16 %v25_v4, %v24_v2  ;;  %154 = vmatprep.mubr.msk.f32.mxu0 %vm26_vm0, %v20_v5 }
   0x4   :  { %9 = vsyncpa [#allocation3], 0  ;;  %158 = vmatprep.subr.bf16.mxu0 %v157_v3  ;;  %v21_v7 = vld [vmem:[%s263_s0 + $0x8] sm:$0xff]  ;;  %v18_v9 = vld [vmem:[%s266_s3] sm:$0xff]  ;;  %s192_s6 = smov [#allocation2]  }
   0x5   :  { %160 = vmatpush3.bf16.msra.mxu0 %v157_v3  ;;  %v19_v8 = vld [vmem:[%s266_s3 + $0x8] sm:$0xff]  ;;  %v139_v11 = vld [vmem:[%s265_s2] ss:$0 sm:$0xff]  ;;  %s126_s7 = sshll.u32 %s192_s6, 4  ;;  %s127_s7 = int_to_ptr.vmem [resolvable:$true] %s126_s7 }
   0x6   :  { %162 = vmatprep.subr.bf16.mxu0 %v161_v6  ;;  %s168_s0 = scalar_lea.vmem %s127_s7, 256  ;;  %p173_p1 = scmp.lt.s32.totalorder %s127_s7, %s127_s7 }
   0x7   :  { %p169_p0 = scmp.ne.s32.totalorder %s127_s7, %s168_s0  ;;  %p174_p2 = scmp.lt.s32.totalorder %s168_s0, %s168_s0 }
   0x9   :  { %164 = vmatpush3.bf16.msra.mxu0 %v161_v6  ;;  %p175_p3 = por %p174_p2, %p173_p1 }
   0xb   :  { %p176_p4 = pnand %p175_p3, %p169_p0 }
   0xc   :  { %155 = vmatmul.mubr.msk.f32.vlgmr.msra.gmra.mrb[0].mxu0 %vm26_vm0, %v21_v7 }
  0xdf   :  { %v156_v10 = vpop.f32.mrb[0].mxu0 }
  0xe0   :  { %v109_v12 = vadd.f32 %v156_v10, %v19_v8  ;;  %v99_v13 = vpop.f32.mrb[1].mxu0 }
  0xe1   :  { %v108_v14 = vadd.f32 %v99_v13, %v18_v9 }
  0xe2   :  { %v118_v15 = vadd.f32 %v139_v11, %v109_v12 }
  0xe3   :  { %v117_v16 = vadd.f32 %v139_v11, %v108_v14 }
  0xe4   :  { %120 = vst.msk [vmem:[#allocation2 + $0x8] sm:$0xff] %vm26_vm0, %v118_v15 }
  0xe5   :  { %119 = vst.msk [vmem:[#allocation2] sm:$0xff] %vm26_vm0, %v117_v16 }
  0xe6   :  { %179 = shalt.err (!%p176_p4)
}
  0xe7   :  { %s180_s8 = scalar_lea.hbm %s267_s4, 256 }
  0xe8   :  { %p181_p5 = scmp.ne.s32.totalorder %s267_s4, %s180_s8  ;;  %p184_p6 = scmp.lt.u32.totalorder %s180_s8, %s267_s4 }
  0xea   :  { %p186_p7 = pnand %p184_p6, %p181_p5 }
  0xec   :  { %189 = shalt.err (!%p186_p7)
}
  0xed   :  { %s193_s13 = smov 128   ;;  %s194_s14 = smov 8  }
  0xee   :  { %132 = dma.vmem_to_hbm [thread:$0]  %s127_s7, 256, %s267_s4, [#allocation3], %s193_s13, %s193_s13, %s194_s14  }
  0xef   :  { %190 = dma.done.wait [#allocation3], 256  }
  0xf0   :  { %191 = vsyncadd [#allocation3], 4294967040 }
  0xf1   :  { %136 = vsyncpa [#allocation3], 1 }

// kernel: bi_attention_block_forward.7
= control target key start
LH: loop header
LB: loop body
LE: loop exit
PB: predicated region body
PF: predicated region fallthrough
CT: control target
= control target key end

     0   :  { %s1172_s21 = smov 0   ;;  %s1174_s22 = smov 0   ;;  %s1265_s0 = inlined_call_operand.vmem [shape: f32[2,4,16,8], index: 0, kind: input, shape index: {}]   ;;  %s1266_s1 = inlined_call_operand.vmem [shape: f32[2,4,8,8], index: 1, kind: input, shape index: {}]   ;;  %s1267_s2 = inlined_call_operand.vmem [shape: f32[2,4,16,8], index: 2, kind: input, shape index: {}]   ;;  %s1268_s3 = inlined_call_operand.vmem [shape: f32[2,4,8,8], index: 3, kind: input, shape index: {}]   ;;  %s1269_s4 = inlined_call_operand.vmem [shape: f32[2,1,8], index: 4, kind: input, shape index: {}]   ;;  %s1270_s5 = inlined_call_operand.vmem [shape: f32[2,4,16,8], index: 5, kind: output, shape index: {0}]   ;;  %s1271_s6 = inlined_call_operand.vmem [shape: f32[2,4,8,8], index: 6, kind: output, shape index: {1}]  }
   0x1   :  { %s1176_s23 = smov 0   ;;  %s1178_s24 = smov 0  }
   0x2   :  { %s1180_s25 = smov 0  }
   0x3 LB: > { %s26_s26 = sadd.s32 1, %s1124_s23  ;;  %s29_s27 = sadd.s32 1, %s1128_s24  ;;  %s1132_s25 = sphi %s1180_s25, %s17_s25   ;;  %s1128_s24 = sphi %s1178_s24, %s1275_s24   ;;  %s1124_s23 = sphi %s1176_s23, %s1274_s23   ;;  %s1120_s22 = sphi %s1174_s22, %s1273_s22   ;;  %s1116_s21 = sphi %s1172_s21, %s1272_s21  }
   0x4   : > { %p27_p0 = scmp.ge.s32.totalorder %s26_s26, 4  ;;  %p980_p1 = scmp.ge.s32.totalorder %s1132_s25, 1 }
   0x5   : > { %p291_p2 = scmp.lt.s32.totalorder %s1132_s25, 9 }
   0x6   : > { %s1277_s26 = smov (%p27_p0, %s26_s26), 0  ;;  %s1279_s27 = smov (!%p27_p0, %s29_s27), %s1128_s24 }
   0x7   : > { %p292_p3 = pnand %p980_p1, %p291_p2  ;;  %p31_p4 = scmp.ge.s32.totalorder %s1279_s27, 2 }
   0x8   : > { %p365_p5 = scmp.lt.s32.totalorder (!%p292_p3), %s1120_s22, 1  ;;  %p367_p6 = scmp.lt.s32.totalorder (!%p292_p3), %s1116_s21, 3  ;;  %vm425_vm0 = vcmask (!%p292_p3), 64512   ;;  %v655_v3 = vlaneseq (!%p292_p3)  ;;  %v1134_v59 = vmov (!%p292_p3), 0.0|0.0   ;;  %vm577_vm2 = vcmask (!%p292_p3), 130048  }
   0x9   : > { %s1281_s27 = smov (%p31_p4, %s1279_s27), 0  ;;  %295 = sbr.rel (%p292_p3) target bundleno = 775 (0x307), region = 40 }
   0xa   : > { %v656_v5 = vshrl.u32 (!%p292_p3), %v655_v3, 7  ;;  %1034 = vmatprep.subr.bf16.mxu1 (!%p292_p3), %v1134_v59  ;;  %vm1135_vm3 = vmmov (!%p292_p3), 0   ;;  %v1136_v62 = vmov (!%p292_p3), 0.0  }
   0xb   : > { %1026 = vmatprep.mubr.msk.f32.mxu1 (!%p292_p3), %vm1135_vm3, %v1136_v62 }
   0xc   : > { %v657_v6 = vsub.s32 (!%p292_p3), 0, %v656_v5 }
  0x10   : > { %s1283_s22 = smov (!%p365_p5, %s1120_s22), 1  ;;  %s1285_s21 = smov (!%p367_p6, %s1116_s21), 3 }
  0x11   : > { %s984_s28 = sshll.u32 %s1283_s22, 2  ;;  %s982_s29 = sshll.u32 %s1283_s22, 3 }
  0x12   : > { %s379_s30 = sadd.s32 %s984_s28, %s1285_s21  ;;  %s981_s7 = sshll.u32 %s1285_s21, 1 }
  0x13   : > { %s1202_s8 = sshll.u32 %s379_s30, 3  ;;  %s371_s9 = sadd.s32 %s982_s29, %s981_s7 }
  0x14   : > { %s381_s12 = scalar_lea.vmem %s1266_s1, %s1202_s8  ;;  %s1208_s13 = sshll.u32 %s371_s9, 3 }
  0x15   : > { %v421_v0 = vld [vmem:[%s381_s12] sm:$0xff]  ;;  %s373_s16 = scalar_lea.vmem %s1265_s0, %s1208_s13  ;;  %s401_s19 = scalar_lea.vmem %s1269_s4, %s1283_s22 }
  0x16   : > { %1017 = vmatprep.subr.msk.mxu0 %vm425_vm0, %v421_v0  ;;  %v419_v1 = vld [vmem:[%s373_s16] sm:$0xff]  ;;  %v420_v2 = vld [vmem:[%s373_s16 + $0x8] sm:$0xff]  ;;  %s390_s22 = scalar_lea.vmem %s1267_s2, %s1208_s13  ;;  %s398_s30 = scalar_lea.vmem %s1268_s3, %s1202_s8 }
  0x17   : > { %1018 = vmatpush3.xpose.msk.msra.mxu0 %vm425_vm0, %v421_v0  ;;  %1019 = vmatprep.mubr.msk.f32.mxu0 %vm425_vm0, %v419_v1  ;;  %v651_v4 = vld [vmem:[%s401_s19] sm:$0x1]  ;;  %v423_v57 = vld [vmem:[%s390_s22 + $0x8] sm:$0xff]  ;;  %s418_s10 = scalar_lea.vmem %s1271_s6, %s1202_s8  ;;  %s410_s14 = scalar_lea.vmem %s1270_s5, %s1208_s13 }
  0x18   : > { %vm652_vm1 = vcmp.eq.f32.partialorder %v651_v4, 0.0  ;;  %v422_v56 = vld [vmem:[%s390_s22] sm:$0xff] }
  0x19   : > { %v653_v7 = vsel %vm652_vm1, -9e+15, %v651_v4  ;;  %v1035_v58 = vpack.c.bf16 %v423_v57, %v422_v56  ;;  %v424_v60 = vld [vmem:[%s398_s30] sm:$0xff] }
  0x1a   : > { %1020 = vmatmul.mubr.msk.f32.vlgmr.msra.gmra.mrb[0].mxu0 %vm425_vm0, %v420_v2  ;;  %v658_v9 = vrot.slane %v653_v7, %v657_v6  ;;  %1029 = vmatprep.subr.mxu0 %v424_v60 }
  0x1b   : > { %1036 = vmatpush3.bf16.msra.mxu1 %v1035_v58  ;;  %1030 = vmatpush3.msra.mxu0 %v424_v60 }
  0xed   : > { %v1021_v8 = vpop.f32.mrb[0].mxu0 }
  0xee   : > { %v1000_v10 = vclamps-f32 %v1021_v8, 50000.0  ;;  %v501_v11 = vpop.f32.mrb[1].mxu0 }
  0xef   : > { %v999_v12 = vclamps-f32 %v501_v11, 50000.0 }
  0xf0   : > { %v515_v13 = vsel %vm425_vm0, %v1000_v10, -inf  ;;  %v661_v18 = vadd.f32 %v1000_v10, %v658_v9 }
  0xf1   : > { %v514_v14 = vsel %vm425_vm0, %v999_v12, -inf  ;;  %v660_v15 = vadd.f32 %v999_v12, %v658_v9 }
  0xf2   : > { %v516_v16 = vmax.f32 %v514_v14, %v515_v13  ;;  %v665_v21 = vsel %vm425_vm0, %v661_v18, -inf }
  0xf3   : > { %v662_v17 = vsel %vm425_vm0, %v660_v15, -inf }
  0xf4   : > { %v517_v19 = vrot.slane %v516_v16, 4  ;;  %663 = vmax.xlane.f32.xlu0 %v662_v17 }
  0xf6   : > { %v518_v20 = vmax.f32 %v516_v16, %v517_v19 }
  0xf8   : > { %v519_v22 = vrot.slane %v518_v20, 2  ;;  %666 = vmax.xlane.f32.xlu0 %v665_v21 }
  0xfa   : > { %v520_v23 = vmax.f32 %v518_v20, %v519_v22 }
  0xfc   : > { %v521_v24 = vrot.slane %v520_v23, 1 }
  0xfe   : > { %v522_v25 = vmax.f32 %v520_v23, %v521_v24 }
 0x100   : > { %v523_v26 = vsub.f32 %v999_v12, %v522_v25  ;;  %v524_v27 = vsub.f32 %v1000_v10, %v522_v25 }
 0x102   : > { %v1001_v28 = vclamps-f32 %v523_v26, 50000.0  ;;  %v1002_v29 = vclamps-f32 %v524_v27, 50000.0 }
 0x104   : > { %v529_v30 = vmul.f32 1.442695, %v1001_v28  ;;  %v531_v31 = vmul.f32 1.442695, %v1002_v29 }
 0x106   : > { %1080 = vpow2.f32 %v529_v30 }
 0x107   : > { %1082 = vpow2.f32 %v531_v31 }
 0x110   : > { %v1081_v32 = vpop.eup %1080 }
 0x111   : > { %v1083_v33 = vpop.eup %1082  ;;  %v533_v34 = vsel %vm425_vm0, %v1081_v32, 0.0 }
 0x112   : > { %v534_v35 = vsel %vm425_vm0, %v1083_v33, 0.0 }
 0x113   : > { %v535_v36 = vadd.f32 %v534_v35, %v533_v34 }
 0x115   : > { %v536_v37 = vrot.slane %v535_v36, 4 }
 0x117   : > { %v537_v38 = vadd.f32 %v536_v37, %v535_v36 }
 0x119   : > { %v538_v39 = vrot.slane %v537_v38, 2 }
 0x11b   : > { %v539_v40 = vadd.f32 %v538_v39, %v537_v38 }
 0x11d   : > { %v540_v41 = vrot.slane %v539_v40, 1 }
 0x11f   : > { %v541_v42 = vadd.f32 %v540_v41, %v539_v40 }
 0x121   : > { %1084 = vrcp.f32 %v541_v42 }
 0x12b   : > { %v1085_v43 = vpop.eup %1084 }
 0x12c   : > { %v543_v44 = vmul.f32 %v1085_v43, %v1081_v32  ;;  %v544_v45 = vmul.f32 %v1085_v43, %v1083_v33 }
 0x12e   : > { %545 = vxpose.xlu0.b32.start [1/2] (short) (narrow) %v543_v44, 8 }
 0x132   : > { %546 = vxpose.xlu0.b32.end [2/2] (short) (narrow) %v544_v45, 8 }
 0x181   : > { %v664_v46 = vpop.xlane.xlu0 %663 }
 0x182   : > { %v668_v47 = vsub.f32 %v660_v15, %v664_v46 }
 0x184   : > { %v670_v48 = vmul.f32 1.442695, %v668_v47 }
 0x185   : > { %v667_v49 = vpop.xlane.xlu0 %666 }
 0x186   : > { %1086 = vpow2.f32 %v670_v48  ;;  %v669_v50 = vsub.f32 %v661_v18, %v667_v49 }
 0x188   : > { %v672_v51 = vmul.f32 1.442695, %v669_v50 }
 0x18a   : > { %1088 = vpow2.f32 %v672_v51 }
 0x190   : > { %v1087_v52 = vpop.eup %1086 }
 0x191   : > { %v674_v53 = vsel %vm425_vm0, %v1087_v52, 0.0 }
 0x192   : > { %675 = vadd.xlane.f32.xlu1 %v674_v53 }
 0x194   : > { %v1089_v54 = vpop.eup %1088 }
 0x195   : > { %v677_v55 = vsel %vm425_vm0, %v1089_v54, 0.0 }
 0x196   : > { %678 = vadd.xlane.f32.xlu1 %v677_v55 }
 0x1ae   : > { %v561_v61 = vpop.trf.xlu0 }
 0x1af   : > { %1027 = vmatmul.mubr.msk.f32.vlgmr.msra.gmra.mrb[0].mxu1 %vm577_vm2, %v561_v61 }
 0x21f   : > { %v676_v63 = vpop.xlane.xlu1 %675 }
 0x220   : > { %1090 = vrcp.f32 %v676_v63 }
 0x223   : > { %v679_v0 = vpop.xlane.xlu1 %678 }
 0x224   : > { %1092 = vrcp.f32 %v679_v0 }
 0x22a   : > { %v1091_v1 = vpop.eup %1090 }
 0x22b   : > { %v681_v2 = vmul.f32 %v1091_v1, %v1087_v52 }
 0x22d   : > { %1031 = vmatprep.mubr.msk.f32.mxu0 %vm425_vm0, %v681_v2 }
 0x22e   : > { %v1093_v3 = vpop.eup %1092 }
 0x22f   : > { %v683_v4 = vmul.f32 %v1093_v3, %v1089_v54 }
 0x231   : > { %1032 = vmatmul.mubr.msk.f32.vlgmr.msra.gmra.mrb[2].mxu0 %vm425_vm0, %v683_v4 }
 0x282   : > { %v647_v5 = vpop.f32.mrb[0].mxu1 }
 0x283   : > { %767 = vst.msk [vmem:[%s418_s10] sm:$0xff] %vm425_vm0, %v647_v5  ;;  %v1028_v6 = vpop.f32.mrb[1].mxu1 }
 0x304   : > { %v1033_v7 = vpop.f32.mrb[2].mxu0 }
 0x305   : > { %766 = vst.msk [vmem:[%s410_s14 + $0x8] sm:$0xff] %vm425_vm0, %v1033_v7  ;;  %v756_v8 = vpop.f32.mrb[3].mxu0 }
 0x306   : > { %765 = vst.msk [vmem:[%s410_s14] sm:$0xff] %vm425_vm0, %v756_v8 }
 0x307 PF: > { %s17_s25 = sadd.s32 1, %s1132_s25   ;;  %s1272_s21 = smov %s1124_s23 }
 0x308   : > { %p14_p7 = scmp.ge.s32.totalorder %s17_s25, 10   ;;  %s1273_s22 = smov %s1128_s24 }
 0x309   : > { %s1274_s23 = smov %s1277_s26  ;;  %s1275_s24 = smov %s1281_s27 }
 0x30a   :  { %16 = sbr.rel (!%p14_p7) target bundleno = 3 (0x3), region = 94 }

// kernel: bi_attention_block_forward.8
= control target key start
LH: loop header
LB: loop body
LE: loop exit
PB: predicated region body
PF: predicated region fallthrough
CT: control target
= control target key end

     0   :  { %vm30_vm0 = vcmask 261120   ;;  %s316_s0 = inlined_call_operand.vmem [shape: f32[32,32], index: 0, kind: input, shape index: {}]   ;;  %s317_s1 = inlined_call_operand.vmem [shape: f32[32,32], index: 1, kind: input, shape index: {}]   ;;  %s318_s2 = inlined_call_operand.vmem [shape: f32[1,32], index: 2, kind: input, shape index: {}]   ;;  %s319_s3 = inlined_call_operand.vmem [shape: f32[32,32], index: 3, kind: input, shape index: {}]   ;;  %s320_s4 = inlined_call_operand.hbm [shape: f32[32,32], index: 4, kind: output, shape index: {}]  }
   0x1   :  { %v26_v0 = vld [vmem:[%s317_s1] sm:$0xff]  ;;  %v27_v1 = vld [vmem:[%s317_s1 + $0x8] sm:$0xff]  ;;  %v28_v2 = vld [vmem:[%s317_s1 + $0x10] sm:$0xff] }
   0x2   :  { %v190_v3 = vpack.c.bf16 %v27_v1, %v26_v0  ;;  %v29_v4 = vld [vmem:[%s317_s1 + $0x18] sm:$0xff]  ;;  %v22_v5 = vld [vmem:[%s316_s0] sm:$0xff]  ;;  %v24_v6 = vld [vmem:[%s316_s0 + $0x10] sm:$0xff] }
   0x3   :  { %v194_v7 = vpack.c.bf16 %v29_v4, %v28_v2  ;;  %184 = vmatprep.mubr.msk.f32.mxu0 %vm30_vm0, %v22_v5  ;;  %187 = vmatprep.mubr.msk.f32.mxu1 %vm30_vm0, %v24_v6 }
   0x4   :  { %191 = vmatprep.subr.bf16.mxu0 %v190_v3  ;;  %198 = vmatprep.subr.bf16.mxu1 %v190_v3 }
   0x5   :  { %9 = vsyncpa [#allocation3], 0  ;;  %193 = vmatpush3.bf16.msra.mxu0 %v190_v3  ;;  %200 = vmatpush3.bf16.msra.mxu1 %v190_v3  ;;  %v23_v8 = vld [vmem:[%s316_s0 + $0x8] sm:$0xff]  ;;  %v25_v9 = vld [vmem:[%s316_s0 + $0x18] sm:$0xff]  ;;  %s229_s13 = smov [#allocation2]  }
   0x6   :  { %195 = vmatprep.subr.bf16.mxu0 %v194_v7  ;;  %199 = vmatprep.subr.bf16.mxu1 %v194_v7  ;;  %v19_v10 = vld [vmem:[%s319_s3 + $0x8] sm:$0xff]  ;;  %v21_v11 = vld [vmem:[%s319_s3 + $0x18] sm:$0xff]  ;;  %v18_v12 = vld [vmem:[%s319_s3] sm:$0xff]  ;;  %s152_s14 = sshll.u32 %s229_s13, 4  ;;  %s153_s14 = int_to_ptr.vmem [resolvable:$true] %s152_s14 }
   0x7   :  { %v20_v13 = vld [vmem:[%s319_s3 + $0x10] sm:$0xff]  ;;  %v167_v15 = vld [vmem:[%s318_s2] ss:$0 sm:$0xff]  ;;  %s205_s2 = scalar_lea.vmem %s153_s14, 512  ;;  %p210_p1 = scmp.lt.s32.totalorder %s153_s14, %s153_s14 }
   0x8   :  { %p206_p0 = scmp.ne.s32.totalorder %s153_s14, %s205_s2  ;;  %p211_p2 = scmp.lt.s32.totalorder %s205_s2, %s205_s2 }
   0x9   :  { %197 = vmatpush3.bf16.msra.mxu0 %v194_v7  ;;  %201 = vmatpush3.bf16.msra.mxu1 %v194_v7 }
   0xa   :  { %p212_p3 = por %p211_p2, %p210_p1 }
   0xc   :  { %185 = vmatmul.mubr.msk.f32.vlgmr.msra.gmra.mrb[0].mxu0 %vm30_vm0, %v23_v8  ;;  %188 = vmatmul.mubr.msk.f32.vlgmr.msra.gmra.mrb[0].mxu1 %vm30_vm0, %v25_v9  ;;  %p213_p4 = pnand %p212_p3, %p206_p0 }
  0xdf   :  { %v186_v14 = vpop.f32.mrb[0].mxu0  ;;  %v189_v16 = vpop.f32.mrb[0].mxu1 }
  0xe0   :  { %v129_v17 = vadd.f32 %v186_v14, %v19_v10  ;;  %v131_v18 = vadd.f32 %v189_v16, %v21_v11  ;;  %v109_v19 = vpop.f32.mrb[1].mxu0  ;;  %v119_v20 = vpop.f32.mrb[1].mxu1 }
  0xe1   :  { %v128_v21 = vadd.f32 %v109_v19, %v18_v12  ;;  %v130_v22 = vadd.f32 %v119_v20, %v20_v13 }
  0xe2   :  { %v140_v23 = vadd.f32 %v167_v15, %v129_v17  ;;  %v142_v24 = vadd.f32 %v167_v15, %v131_v18 }
  0xe3   :  { %v139_v25 = vadd.f32 %v167_v15, %v128_v21  ;;  %v141_v26 = vadd.f32 %v167_v15, %v130_v22 }
  0xe4   :  { %144 = vst.msk [vmem:[#allocation2 + $0x8] sm:$0xff] %vm30_vm0, %v140_v23  ;;  %146 = vst.msk [vmem:[#allocation2 + $0x18] sm:$0xff] %vm30_vm0, %v142_v24 }
  0xe5   :  { %143 = vst.msk [vmem:[#allocation2] sm:$0xff] %vm30_vm0, %v139_v25  ;;  %145 = vst.msk [vmem:[#allocation2 + $0x10] sm:$0xff] %vm30_vm0, %v141_v26 }
  0xe6   :  { %216 = shalt.err (!%p213_p4)
}
  0xe7   :  { %s217_s16 = scalar_lea.hbm %s320_s4, 512 }
  0xe8   :  { %p218_p5 = scmp.ne.s32.totalorder %s320_s4, %s217_s16  ;;  %p221_p6 = scmp.lt.u32.totalorder %s217_s16, %s320_s4 }
  0xea   :  { %p223_p7 = pnand %p221_p6, %p218_p5 }
  0xec   :  { %226 = shalt.err (!%p223_p7)
}
  0xed   :  { %s230_s21 = smov 128   ;;  %s231_s22 = smov 8  }
  0xee   :  { %158 = dma.vmem_to_hbm [thread:$0]  %s153_s14, 512, %s320_s4, [#allocation3], %s230_s21, %s230_s21, %s231_s22  }
  0xef   :  { %227 = dma.done.wait [#allocation3], 512  }
  0xf0   :  { %228 = vsyncadd [#allocation3], 4294966784 }
  0xf1   :  { %162 = vsyncpa [#allocation3], 1 }

</bundles_post_ra>
